<compile_context>
chip_gen: v7x
topology: tpu7x:2x2x1
jax: 0.10.0
libtpu: 0.0.40
codegen_flags: <defaults>
</compile_context>

<pallas_src>
import math

import jax
import jax.numpy as jnp
from jax.experimental import pallas as pl
from jax.experimental.pallas import tpu as pltpu


# ----------------------------------------------------------------------------
# Fused kernel: all encoder layers (inner grid axis) + pool + fc epilogue.
# grid = (batch_chunks, nlayer); the f32 residual stream lives in x_vmem.
# ----------------------------------------------------------------------------
def _transformer_kernel(x_hbm,
                        wq_ref, wk_ref, wv_ref, bq_ref, bk_ref, bv_ref,
                        wo_ref, bo_ref, ln1g_ref, ln1b_ref,
                        w1_ref, b1_ref, w2_ref, b2_ref, ln2g_ref, ln2b_ref,
                        wfc_ref, bfc_ref,
                        logits_ref, pool_ref,
                        x_vmem, dma_sem):
    c = pl.program_id(0)                      # batch chunk  ("parallel")
    l = pl.program_id(1)                      # encoder layer ("arbitrary")
    Bc, S, E = x_vmem.shape
    nhead = wq_ref.shape[1]
    dh = wq_ref.shape[-1]
    M = Bc * S
    scale = 1.0 / math.sqrt(dh)

    # ---- layer 0: DMA this chunk's embedded input HBM -> resident VMEM ------
    # (x input uses memory_space=pl.ANY, so it does not occupy a pinned,
    #  double-buffered VMEM block for the whole layer loop.)
    @pl.when(l == 0)
    def _():
        cp = pltpu.make_async_copy(x_hbm.at[pl.ds(c * Bc, Bc)], x_vmem, dma_sem)
        cp.start()
        cp.wait()

    x = x_vmem[...].reshape(M, E)             # f32 residual stream
    xb = x.astype(jnp.bfloat16)               # bf16 operand for all matmuls

    # ---- multi-head self-attention -------------------------------------------
    # Per-head weight slices were prepared host-side, so every op below is a
    # full-contraction MXU matmul (no lane slicing, no head scratch buffers).
    acc = None
    for h in range(nhead):
        qh = jnp.dot(xb, wq_ref[0, h], preferred_element_type=jnp.float32) + bq_ref[0, h]
        kh = jnp.dot(xb, wk_ref[0, h], preferred_element_type=jnp.float32) + bk_ref[0, h]
        vh = jnp.dot(xb, wv_ref[0, h], preferred_element_type=jnp.float32) + bv_ref[0, h]
        qh = (qh * scale).astype(jnp.bfloat16).reshape(Bc, S, dh)
        kh = kh.astype(jnp.bfloat16).reshape(Bc, S, dh)
        vh = vh.astype(jnp.bfloat16).reshape(Bc, S, dh)

        # scores / softmax / context, batched over the chunk's batch dim.
        # TODO(synk): replace with flash-style KV-block tiling for large S.
        s = jnp.einsum('bqd,bkd->bqk', qh, kh,
                       preferred_element_type=jnp.float32)      # (Bc, S, S) f32
        s = s - jnp.max(s, axis=-1, keepdims=True)
        p = jnp.exp(s)
        p = p / jnp.sum(p, axis=-1, keepdims=True)              # exact softmax
        ctx = jnp.einsum('bqk,bkd->bqd', p.astype(jnp.bfloat16), vh,
                         preferred_element_type=jnp.float32)    # (Bc, S, dh)

        # output projection contribution of head h (sum over heads on the MXU)
        part = jnp.dot(ctx.astype(jnp.bfloat16).reshape(M, dh), wo_ref[0, h],
                       preferred_element_type=jnp.float32)      # (M, E)
        acc = part if acc is None else acc + part
    attn = acc + bo_ref[0]

    # ---- residual + LayerNorm1 (post-LN, eps=1e-5, biased variance) ----------
    x1 = x + attn
    mu1 = jnp.mean(x1, axis=-1, keepdims=True)
    var1 = jnp.mean((x1 - mu1) ** 2, axis=-1, keepdims=True)
    x1 = (x1 - mu1) * jax.lax.rsqrt(var1 + 1e-5) * ln1g_ref[0] + ln1b_ref[0]

    # ---- FFN: linear -> ReLU -> linear (bf16 operands, f32 accumulate) -------
    h1 = jnp.dot(x1.astype(jnp.bfloat16), w1_ref[0],
                 preferred_element_type=jnp.float32) + b1_ref[0]
    h1 = jnp.maximum(h1, 0.0)
    ff = jnp.dot(h1.astype(jnp.bfloat16), w2_ref[0],
                 preferred_element_type=jnp.float32) + b2_ref[0]

    # ---- residual + LayerNorm2 ------------------------------------------------
    x2 = x1 + ff
    mu2 = jnp.mean(x2, axis=-1, keepdims=True)
    var2 = jnp.mean((x2 - mu2) ** 2, axis=-1, keepdims=True)
    x2 = (x2 - mu2) * jax.lax.rsqrt(var2 + 1e-5) * ln2g_ref[0] + ln2b_ref[0]

    x_vmem[...] = x2.reshape(Bc, S, E)

    # ---- last-layer epilogue: max-pool over embed dim + Linear(S, C) ----------
    @pl.when(l == pl.num_programs(1) - 1)
    def _():
        pool = jnp.max(x2.reshape(Bc, S, E), axis=-1)           # (Bc, S) f32
        pool_ref[...] = pool.reshape(1, Bc, S)
        logits = (jnp.dot(pool.astype(jnp.bfloat16), wfc_ref[...],
                          preferred_element_type=jnp.float32) + bfc_ref[...])
        logits_ref[...] = logits.reshape(1, Bc, logits_ref.shape[-1])


def transformer_pallas(x, stacked, wfc_t, bfc, *, num_chunks=None):
    """x: [B, S, E] f32 (embedded + pos-encoded); stacked: per-layer weights
    with a leading nlayer dim (matmul weights bf16, bias/LN params f32)."""
    B, S, E = x.shape
    L, nhead = stacked["wq"].shape[:2]
    H = stacked["w1"].shape[-1]
    C = wfc_t.shape[-1]

    # Leading "parallel" grid axis over batch chunks: lets v7x's 2 TensorCores
    # split the batch; degenerates to a harmless loop on single-TC v5e/v6e.
    if num_chunks is None:
        num_chunks = 2 if (B >= 2 and B % 2 == 0) else 1
    Bc = B // num_chunks

    layer_keys = ("wq", "wk", "wv", "bq", "bk", "bv", "wo", "bo",
                  "ln1g", "ln1b", "w1", "b1", "w2", "b2", "ln2g", "ln2b")
    layer_arrays = [stacked[k] for k in layer_keys]

    def layer_spec(arr):
        nd = arr.ndim
        blk = (1,) + arr.shape[1:]
        return pl.BlockSpec(blk, lambda c, l, _nd=nd: (l,) + (0,) * (_nd - 1))

    def full_spec(arr):
        nd = arr.ndim
        return pl.BlockSpec(arr.shape, lambda c, l, _nd=nd: (0,) * _nd)

    in_specs = ([pl.BlockSpec(memory_space=pl.ANY)]           # x: manual DMA @ layer 0
                + [layer_spec(a) for a in layer_arrays]
                + [full_spec(wfc_t), full_spec(bfc)])

    out_specs = (pl.BlockSpec((1, Bc, C), lambda c, l: (c, 0, 0)),
                 pl.BlockSpec((1, Bc, S), lambda c, l: (c, 0, 0)))

    # VMEM budget: double-buffered bf16 weight blocks + f32 bias/LN blocks +
    # resident activation + live attention intermediates.  Cap at 48 MiB to
    # leave headroom below v7x's 64 MiB physical per-core VMEM.
    weight_bytes = 2 * (4 * E * E + 2 * E * H) * 2            # bf16, x2 buffers
    small_bytes = 2 * (10 * E + 2 * H + 6 * E) * 4
    act_bytes = 5 * (Bc * S * E) * 4 + 2 * (Bc * S * S) * 4
    est = weight_bytes + small_bytes + act_bytes + S * C * 2
    vmem_limit = int(min(max(2 * est, 32 * 1024 * 1024), 48 * 1024 * 1024))

    logits, pool = pl.pallas_call(
        _transformer_kernel,
        out_shape=(jax.ShapeDtypeStruct((num_chunks, Bc, C), jnp.float32),
                   jax.ShapeDtypeStruct((num_chunks, Bc, S), jnp.float32)),
        grid=(num_chunks, L),
        in_specs=in_specs,
        out_specs=out_specs,
        scratch_shapes=[pltpu.VMEM((Bc, S, E), jnp.float32),   # resident activation
                        pltpu.SemaphoreType.DMA(())],          # layer-0 input DMA
        compiler_params=pltpu.CompilerParams(
            dimension_semantics=("parallel", "arbitrary"),
            vmem_limit_bytes=vmem_limit),
    )(x, *layer_arrays, wfc_t, bfc)
    return logits.reshape(B, C), pool.reshape(B, S)


# ----------------------------------------------------------------------------
# Glue: embedding lookup, sinusoidal positional encoding, parameter init.
# ----------------------------------------------------------------------------
def make_positional_encoding(max_len, d_model):
    position = jnp.arange(max_len, dtype=jnp.float32)[:, None]
    div_term = jnp.exp(jnp.arange(0, d_model, 2, dtype=jnp.float32)
                       * (-math.log(10000.0) / d_model))
    pe = jnp.zeros((max_len, d_model), dtype=jnp.float32)
    pe = pe.at[:, 0::2].set(jnp.sin(position * div_term))
    pe = pe.at[:, 1::2].set(jnp.cos(position * div_term))
    return pe                                                   # [max_len, d_model]


def init_params(key, n_vocab, embed, nhead, hidden, nlayer, sen_length, num_classes):
    dh = embed // nhead
    keys = jax.random.split(key, 2 + 6 * nlayer)
    ki = iter(keys)
    std = 0.02

    emb_table = jax.random.normal(next(ki), (n_vocab, embed), jnp.float32) * std
    emb_table = emb_table.at[n_vocab - 1].set(0.0)              # padding_idx row

    layer_keys = ("wq", "wk", "wv", "bq", "bk", "bv", "wo", "bo",
                  "ln1g", "ln1b", "w1", "b1", "w2", "b2", "ln2g", "ln2b")
    per_layer = {k: [] for k in layer_keys}
    for _ in range(nlayer):
        wq = jax.random.normal(next(ki), (embed, embed), jnp.float32) * std
        wk = jax.random.normal(next(ki), (embed, embed), jnp.float32) * std
        wv = jax.random.normal(next(ki), (embed, embed), jnp.float32) * std
        wo = jax.random.normal(next(ki), (embed, embed), jnp.float32) * std
        w1 = jax.random.normal(next(ki), (embed, hidden), jnp.float32) * std
        w2 = jax.random.normal(next(ki), (hidden, embed), jnp.float32) * std
        # Pre-split attention weights per head host-side so the kernel never
        # lane-slices activations (review: avoid masked stores / head scratch).
        per_layer["wq"].append(wq.reshape(embed, nhead, dh).transpose(1, 0, 2))
        per_layer["wk"].append(wk.reshape(embed, nhead, dh).transpose(1, 0, 2))
        per_layer["wv"].append(wv.reshape(embed, nhead, dh).transpose(1, 0, 2))
        per_layer["bq"].append(jnp.zeros((nhead, 1, dh), jnp.float32))
        per_layer["bk"].append(jnp.zeros((nhead, 1, dh), jnp.float32))
        per_layer["bv"].append(jnp.zeros((nhead, 1, dh), jnp.float32))
        per_layer["wo"].append(wo.reshape(nhead, dh, embed))
        per_layer["bo"].append(jnp.zeros((1, embed), jnp.float32))
        per_layer["ln1g"].append(jnp.ones((1, embed), jnp.float32))
        per_layer["ln1b"].append(jnp.zeros((1, embed), jnp.float32))
        per_layer["w1"].append(w1)
        per_layer["b1"].append(jnp.zeros((1, hidden), jnp.float32))
        per_layer["w2"].append(w2)
        per_layer["b2"].append(jnp.zeros((1, embed), jnp.float32))
        per_layer["ln2g"].append(jnp.ones((1, embed), jnp.float32))
        per_layer["ln2b"].append(jnp.zeros((1, embed), jnp.float32))

    bf16_keys = {"wq", "wk", "wv", "wo", "w1", "w2"}             # MXU operands in bf16
    stacked = {k: jnp.stack(v, axis=0).astype(
                   jnp.bfloat16 if k in bf16_keys else jnp.float32)
               for k, v in per_layer.items()}

    wfc_t = (jax.random.normal(next(ki), (sen_length, num_classes), jnp.float32)
             * std).astype(jnp.bfloat16)
    bfc = jnp.zeros((1, num_classes), jnp.float32)
    pe = make_positional_encoding(sen_length, embed)
    return emb_table, pe, stacked, wfc_t, bfc


def transformer_forward(input_ids, params):
    emb_table, pe, stacked, wfc_t, bfc = params
    B, S = input_ids.shape
    x = emb_table[input_ids]                     # embedding gather (JAX glue)
    x = x + pe[None, :S, :]                      # positional encoding (dropout = eval identity)
    logits, out_pool = transformer_pallas(x, stacked, wfc_t, bfc)
    return logits, out_pool                      # matches PyTorch return [out, out_pool]


if __name__ == "__main__":
    # small, lane-friendly config consistent with the module
    n_vocab, embed, nhead, hidden, nlayer = 100, 128, 4, 256, 2
    sen_length, num_classes, batch = 16, 4, 2

    key = jax.random.PRNGKey(0)
    k_param, k_ids = jax.random.split(key)
    params = init_params(k_param, n_vocab, embed, nhead, hidden, nlayer,
                         sen_length, num_classes)
    input_ids = jax.random.randint(k_ids, (batch, sen_length), 0, n_vocab,
                                   dtype=jnp.int32)

    fwd = jax.jit(transformer_forward)
    logits, out_pool = fwd(input_ids, params)
    jax.block_until_ready((logits, out_pool))
    assert logits.shape == (batch, num_classes)
    assert out_pool.shape == (batch, sen_length)
    print("KERNEL_OK")
</pallas_src>

<mosaic_0001>
module attributes {stable_mosaic.version = 11 : i64} {
  func.func @_transformer_kernel(%arg0: i32, %arg1: i32, %arg2: memref<2x16x128xf32, #tpu.memory_space<any>>, %arg3: memref<1x4x128x32xbf16, #tpu.memory_space<vmem>>, %arg4: memref<1x4x128x32xbf16, #tpu.memory_space<vmem>>, %arg5: memref<1x4x128x32xbf16, #tpu.memory_space<vmem>>, %arg6: memref<1x4x1x32xf32, #tpu.memory_space<vmem>>, %arg7: memref<1x4x1x32xf32, #tpu.memory_space<vmem>>, %arg8: memref<1x4x1x32xf32, #tpu.memory_space<vmem>>, %arg9: memref<1x4x32x128xbf16, #tpu.memory_space<vmem>>, %arg10: memref<1x1x128xf32, #tpu.memory_space<vmem>>, %arg11: memref<1x1x128xf32, #tpu.memory_space<vmem>>, %arg12: memref<1x1x128xf32, #tpu.memory_space<vmem>>, %arg13: memref<1x128x256xbf16, #tpu.memory_space<vmem>>, %arg14: memref<1x1x256xf32, #tpu.memory_space<vmem>>, %arg15: memref<1x256x128xbf16, #tpu.memory_space<vmem>>, %arg16: memref<1x1x128xf32, #tpu.memory_space<vmem>>, %arg17: memref<1x1x128xf32, #tpu.memory_space<vmem>>, %arg18: memref<1x1x128xf32, #tpu.memory_space<vmem>>, %arg19: memref<16x4xbf16, #tpu.memory_space<vmem>>, %arg20: memref<1x4xf32, #tpu.memory_space<vmem>>, %arg21: memref<1x1x4xf32, #tpu.memory_space<vmem>>, %arg22: memref<1x1x16xf32, #tpu.memory_space<vmem>>, %arg23: memref<1x16x128xf32, #tpu.memory_space<vmem>>, %arg24: memref<!tpu.dma_semaphore, #tpu.memory_space<semaphore_mem>>) attributes {dimension_semantics = [#tpu.dimension_semantics<parallel>, #tpu.dimension_semantics<arbitrary>], iteration_bounds = array<i64: 2, 2>, scalar_prefetch = 0 : i64, scratch_operands = 2 : i64, tpu.core_type = #tpu.core_type<tc>, window_params = [{}, {transform_indices = @transform_1, window_bounds = array<i64: 1, 4, 128, 32>}, {transform_indices = @transform_2, window_bounds = array<i64: 1, 4, 128, 32>}, {transform_indices = @transform_3, window_bounds = array<i64: 1, 4, 128, 32>}, {transform_indices = @transform_4, window_bounds = array<i64: 1, 4, 1, 32>}, {transform_indices = @transform_5, window_bounds = array<i64: 1, 4, 1, 32>}, {transform_indices = @transform_6, window_bounds = array<i64: 1, 4, 1, 32>}, {transform_indices = @transform_7, window_bounds = array<i64: 1, 4, 32, 128>}, {transform_indices = @transform_8, window_bounds = array<i64: 1, 1, 128>}, {transform_indices = @transform_9, window_bounds = array<i64: 1, 1, 128>}, {transform_indices = @transform_10, window_bounds = array<i64: 1, 1, 128>}, {transform_indices = @transform_11, window_bounds = array<i64: 1, 128, 256>}, {transform_indices = @transform_12, window_bounds = array<i64: 1, 1, 256>}, {transform_indices = @transform_13, window_bounds = array<i64: 1, 256, 128>}, {transform_indices = @transform_14, window_bounds = array<i64: 1, 1, 128>}, {transform_indices = @transform_15, window_bounds = array<i64: 1, 1, 128>}, {transform_indices = @transform_16, window_bounds = array<i64: 1, 1, 128>}, {pipeline_mode = #tpu.pipeline_mode<synchronous>, transform_indices = @transform_17, window_bounds = array<i64: 16, 4>}, {pipeline_mode = #tpu.pipeline_mode<synchronous>, transform_indices = @transform_18, window_bounds = array<i64: 1, 4>}, {transform_indices = @transform_19, window_bounds = array<i64: 1, 1, 4>}, {transform_indices = @transform_20, window_bounds = array<i64: 1, 1, 16>}]} {
    %c0_i32 = arith.constant 0 : i32
    %0 = arith.cmpi eq, %arg1, %c0_i32 : i32
    %1 = arith.extui %0 : i1 to i32
    %c0_i32_0 = arith.constant 0 : i32
    %2 = arith.cmpi ne, %1, %c0_i32_0 : i32
    scf.if %2 {
      %c1_i32_191 = arith.constant 1 : i32
      %274 = arith.muli %arg0, %c1_i32_191 : i32
      %c0_i32_192 = arith.constant 0 : i32
      %c0_i32_193 = arith.constant 0 : i32
      %275 = tpu.memref_slice %arg2[%274, %c0_i32_192, %c0_i32_193] : memref<2x16x128xf32, #tpu.memory_space<any>> -> memref<1x16x128xf32, #tpu.memory_space<any>>
      tpu.enqueue_dma source(%275 : memref<1x16x128xf32, #tpu.memory_space<any>>) target(%arg23 : memref<1x16x128xf32, #tpu.memory_space<vmem>>) target_semaphore(%arg24 : memref<!tpu.dma_semaphore, #tpu.memory_space<semaphore_mem>>)
      %c0_i32_194 = arith.constant 0 : i32
      %c0_i32_195 = arith.constant 0 : i32
      %276 = tpu.memref_slice %arg2[%274, %c0_i32_194, %c0_i32_195] : memref<2x16x128xf32, #tpu.memory_space<any>> -> memref<1x16x128xf32, #tpu.memory_space<any>>
      tpu.wait_dma2 semaphore(%arg24 : memref<!tpu.dma_semaphore, #tpu.memory_space<semaphore_mem>>) src(%276 : memref<1x16x128xf32, #tpu.memory_space<any>>) dst(%arg23 : memref<1x16x128xf32, #tpu.memory_space<vmem>>)
    } else {
    }
    %c0 = arith.constant 0 : index
    %c0_1 = arith.constant 0 : index
    %c0_2 = arith.constant 0 : index
    %3 = vector.load %arg23[%c0, %c0_1, %c0_2] : memref<1x16x128xf32, #tpu.memory_space<vmem>>, vector<1x16x128xf32>
    %4 = vector.shape_cast %3 : vector<1x16x128xf32> to vector<16x128xf32>
    %5 = arith.truncf %4 : vector<16x128xf32> to vector<16x128xbf16>
    %c0_3 = arith.constant 0 : index
    %c0_4 = arith.constant 0 : index
    %c0_5 = arith.constant 0 : index
    %c0_6 = arith.constant 0 : index
    %6 = vector.load %arg3[%c0_3, %c0_4, %c0_5, %c0_6] : memref<1x4x128x32xbf16, #tpu.memory_space<vmem>>, vector<1x1x128x32xbf16>
    %7 = vector.shape_cast %6 : vector<1x1x128x32xbf16> to vector<128x32xbf16>
    %cst = arith.constant dense<0.000000e+00> : vector<16x32xf32>
    %8 = tpu.matmul %5, %7, %cst {dimension_numbers = #tpu.dot_dimension_numbers<[1], [0], [0], [1], [0, 0, 1, 1], [], []>} : vector<16x128xbf16>, vector<128x32xbf16>, vector<16x32xf32> -> vector<16x32xf32>
    %c0_7 = arith.constant 0 : index
    %c0_8 = arith.constant 0 : index
    %c0_9 = arith.constant 0 : index
    %c0_10 = arith.constant 0 : index
    %9 = vector.load %arg6[%c0_7, %c0_8, %c0_9, %c0_10] : memref<1x4x1x32xf32, #tpu.memory_space<vmem>>, vector<1x1x1x32xf32>
    %10 = vector.shape_cast %9 : vector<1x1x1x32xf32> to vector<1x32xf32>
    %11 = vector.broadcast %10 : vector<1x32xf32> to vector<16x32xf32>
    %12 = arith.addf %8, %11 : vector<16x32xf32>
    %c0_11 = arith.constant 0 : index
    %c0_12 = arith.constant 0 : index
    %c0_13 = arith.constant 0 : index
    %c0_14 = arith.constant 0 : index
    %13 = vector.load %arg4[%c0_11, %c0_12, %c0_13, %c0_14] : memref<1x4x128x32xbf16, #tpu.memory_space<vmem>>, vector<1x1x128x32xbf16>
    %14 = vector.shape_cast %13 : vector<1x1x128x32xbf16> to vector<128x32xbf16>
    %cst_15 = arith.constant dense<0.000000e+00> : vector<16x32xf32>
    %15 = tpu.matmul %5, %14, %cst_15 {dimension_numbers = #tpu.dot_dimension_numbers<[1], [0], [0], [1], [0, 0, 1, 1], [], []>} : vector<16x128xbf16>, vector<128x32xbf16>, vector<16x32xf32> -> vector<16x32xf32>
    %c0_16 = arith.constant 0 : index
    %c0_17 = arith.constant 0 : index
    %c0_18 = arith.constant 0 : index
    %c0_19 = arith.constant 0 : index
    %16 = vector.load %arg7[%c0_16, %c0_17, %c0_18, %c0_19] : memref<1x4x1x32xf32, #tpu.memory_space<vmem>>, vector<1x1x1x32xf32>
    %17 = vector.shape_cast %16 : vector<1x1x1x32xf32> to vector<1x32xf32>
    %18 = vector.broadcast %17 : vector<1x32xf32> to vector<16x32xf32>
    %19 = arith.addf %15, %18 : vector<16x32xf32>
    %c0_20 = arith.constant 0 : index
    %c0_21 = arith.constant 0 : index
    %c0_22 = arith.constant 0 : index
    %c0_23 = arith.constant 0 : index
    %20 = vector.load %arg5[%c0_20, %c0_21, %c0_22, %c0_23] : memref<1x4x128x32xbf16, #tpu.memory_space<vmem>>, vector<1x1x128x32xbf16>
    %21 = vector.shape_cast %20 : vector<1x1x128x32xbf16> to vector<128x32xbf16>
    %cst_24 = arith.constant dense<0.000000e+00> : vector<16x32xf32>
    %22 = tpu.matmul %5, %21, %cst_24 {dimension_numbers = #tpu.dot_dimension_numbers<[1], [0], [0], [1], [0, 0, 1, 1], [], []>} : vector<16x128xbf16>, vector<128x32xbf16>, vector<16x32xf32> -> vector<16x32xf32>
    %c0_25 = arith.constant 0 : index
    %c0_26 = arith.constant 0 : index
    %c0_27 = arith.constant 0 : index
    %c0_28 = arith.constant 0 : index
    %23 = vector.load %arg8[%c0_25, %c0_26, %c0_27, %c0_28] : memref<1x4x1x32xf32, #tpu.memory_space<vmem>>, vector<1x1x1x32xf32>
    %24 = vector.shape_cast %23 : vector<1x1x1x32xf32> to vector<1x32xf32>
    %25 = vector.broadcast %24 : vector<1x32xf32> to vector<16x32xf32>
    %26 = arith.addf %22, %25 : vector<16x32xf32>
    %cst_29 = arith.constant 0.176776692 : f32
    %27 = vector.broadcast %cst_29 : f32 to vector<16x32xf32>
    %28 = arith.mulf %12, %27 : vector<16x32xf32>
    %29 = arith.truncf %28 : vector<16x32xf32> to vector<16x32xbf16>
    %30 = vector.shape_cast %29 : vector<16x32xbf16> to vector<1x16x32xbf16>
    %31 = arith.truncf %19 : vector<16x32xf32> to vector<16x32xbf16>
    %32 = vector.shape_cast %31 : vector<16x32xbf16> to vector<1x16x32xbf16>
    %33 = arith.truncf %26 : vector<16x32xf32> to vector<16x32xbf16>
    %34 = vector.shape_cast %33 : vector<16x32xbf16> to vector<1x16x32xbf16>
    "tpu.trace_start"() <{level = 10 : i32, message = "bqd,bkd->bqk"}> : () -> ()
    %cst_30 = arith.constant dense<0.000000e+00> : vector<1x16x16xf32>
    %35 = tpu.matmul %30, %32, %cst_30 {dimension_numbers = #tpu.dot_dimension_numbers<[2], [2], [1], [1], [0, 0, 0, 1, 1, 1], [0], [0]>} : vector<1x16x32xbf16>, vector<1x16x32xbf16>, vector<1x16x16xf32> -> vector<1x16x16xf32>
    "tpu.trace_stop"() : () -> ()
    %cst_31 = arith.constant dense<0xFF800000> : vector<1x16xf32>
    %36 = vector.multi_reduction <maximumf>, %35, %cst_31 [2] : vector<1x16x16xf32> to vector<1x16xf32>
    %37 = vector.shape_cast %36 : vector<1x16xf32> to vector<1x16x1xf32>
    %38 = vector.broadcast %37 : vector<1x16x1xf32> to vector<1x16x16xf32>
    %39 = arith.subf %35, %38 : vector<1x16x16xf32>
    %40 = math.exp %39 : vector<1x16x16xf32>
    %cst_32 = arith.constant dense<0.000000e+00> : vector<1x16xf32>
    %41 = vector.multi_reduction <add>, %40, %cst_32 [2] : vector<1x16x16xf32> to vector<1x16xf32>
    %42 = vector.shape_cast %41 : vector<1x16xf32> to vector<1x16x1xf32>
    %43 = vector.broadcast %42 : vector<1x16x1xf32> to vector<1x16x16xf32>
    %44 = arith.divf %40, %43 : vector<1x16x16xf32>
    %45 = arith.truncf %44 : vector<1x16x16xf32> to vector<1x16x16xbf16>
    "tpu.trace_start"() <{level = 10 : i32, message = "bqk,bkd->bqd"}> : () -> ()
    %cst_33 = arith.constant dense<0.000000e+00> : vector<1x16x32xf32>
    %46 = tpu.matmul %45, %34, %cst_33 {dimension_numbers = #tpu.dot_dimension_numbers<[2], [1], [1], [2], [0, 0, 0, 1, 1, 2], [0], [0]>} : vector<1x16x16xbf16>, vector<1x16x32xbf16>, vector<1x16x32xf32> -> vector<1x16x32xf32>
    "tpu.trace_stop"() : () -> ()
    %47 = arith.truncf %46 : vector<1x16x32xf32> to vector<1x16x32xbf16>
    %48 = vector.shape_cast %47 : vector<1x16x32xbf16> to vector<16x32xbf16>
    %c0_34 = arith.constant 0 : index
    %c0_35 = arith.constant 0 : index
    %c0_36 = arith.constant 0 : index
    %c0_37 = arith.constant 0 : index
    %49 = vector.load %arg9[%c0_34, %c0_35, %c0_36, %c0_37] : memref<1x4x32x128xbf16, #tpu.memory_space<vmem>>, vector<1x1x32x128xbf16>
    %50 = vector.shape_cast %49 : vector<1x1x32x128xbf16> to vector<32x128xbf16>
    %cst_38 = arith.constant dense<0.000000e+00> : vector<16x128xf32>
    %51 = tpu.matmul %48, %50, %cst_38 {dimension_numbers = #tpu.dot_dimension_numbers<[1], [0], [0], [1], [0, 0, 1, 1], [], []>} : vector<16x32xbf16>, vector<32x128xbf16>, vector<16x128xf32> -> vector<16x128xf32>
    %c0_39 = arith.constant 0 : index
    %c1 = arith.constant 1 : index
    %c0_40 = arith.constant 0 : index
    %c0_41 = arith.constant 0 : index
    %52 = vector.load %arg3[%c0_39, %c1, %c0_40, %c0_41] : memref<1x4x128x32xbf16, #tpu.memory_space<vmem>>, vector<1x1x128x32xbf16>
    %53 = vector.shape_cast %52 : vector<1x1x128x32xbf16> to vector<128x32xbf16>
    %cst_42 = arith.constant dense<0.000000e+00> : vector<16x32xf32>
    %54 = tpu.matmul %5, %53, %cst_42 {dimension_numbers = #tpu.dot_dimension_numbers<[1], [0], [0], [1], [0, 0, 1, 1], [], []>} : vector<16x128xbf16>, vector<128x32xbf16>, vector<16x32xf32> -> vector<16x32xf32>
    %c0_43 = arith.constant 0 : index
    %c1_44 = arith.constant 1 : index
    %c0_45 = arith.constant 0 : index
    %c0_46 = arith.constant 0 : index
    %55 = vector.load %arg6[%c0_43, %c1_44, %c0_45, %c0_46] : memref<1x4x1x32xf32, #tpu.memory_space<vmem>>, vector<1x1x1x32xf32>
    %56 = vector.shape_cast %55 : vector<1x1x1x32xf32> to vector<1x32xf32>
    %57 = vector.broadcast %56 : vector<1x32xf32> to vector<16x32xf32>
    %58 = arith.addf %54, %57 : vector<16x32xf32>
    %c0_47 = arith.constant 0 : index
    %c1_48 = arith.constant 1 : index
    %c0_49 = arith.constant 0 : index
    %c0_50 = arith.constant 0 : index
    %59 = vector.load %arg4[%c0_47, %c1_48, %c0_49, %c0_50] : memref<1x4x128x32xbf16, #tpu.memory_space<vmem>>, vector<1x1x128x32xbf16>
    %60 = vector.shape_cast %59 : vector<1x1x128x32xbf16> to vector<128x32xbf16>
    %cst_51 = arith.constant dense<0.000000e+00> : vector<16x32xf32>
    %61 = tpu.matmul %5, %60, %cst_51 {dimension_numbers = #tpu.dot_dimension_numbers<[1], [0], [0], [1], [0, 0, 1, 1], [], []>} : vector<16x128xbf16>, vector<128x32xbf16>, vector<16x32xf32> -> vector<16x32xf32>
    %c0_52 = arith.constant 0 : index
    %c1_53 = arith.constant 1 : index
    %c0_54 = arith.constant 0 : index
    %c0_55 = arith.constant 0 : index
    %62 = vector.load %arg7[%c0_52, %c1_53, %c0_54, %c0_55] : memref<1x4x1x32xf32, #tpu.memory_space<vmem>>, vector<1x1x1x32xf32>
    %63 = vector.shape_cast %62 : vector<1x1x1x32xf32> to vector<1x32xf32>
    %64 = vector.broadcast %63 : vector<1x32xf32> to vector<16x32xf32>
    %65 = arith.addf %61, %64 : vector<16x32xf32>
    %c0_56 = arith.constant 0 : index
    %c1_57 = arith.constant 1 : index
    %c0_58 = arith.constant 0 : index
    %c0_59 = arith.constant 0 : index
    %66 = vector.load %arg5[%c0_56, %c1_57, %c0_58, %c0_59] : memref<1x4x128x32xbf16, #tpu.memory_space<vmem>>, vector<1x1x128x32xbf16>
    %67 = vector.shape_cast %66 : vector<1x1x128x32xbf16> to vector<128x32xbf16>
    %cst_60 = arith.constant dense<0.000000e+00> : vector<16x32xf32>
    %68 = tpu.matmul %5, %67, %cst_60 {dimension_numbers = #tpu.dot_dimension_numbers<[1], [0], [0], [1], [0, 0, 1, 1], [], []>} : vector<16x128xbf16>, vector<128x32xbf16>, vector<16x32xf32> -> vector<16x32xf32>
    %c0_61 = arith.constant 0 : index
    %c1_62 = arith.constant 1 : index
    %c0_63 = arith.constant 0 : index
    %c0_64 = arith.constant 0 : index
    %69 = vector.load %arg8[%c0_61, %c1_62, %c0_63, %c0_64] : memref<1x4x1x32xf32, #tpu.memory_space<vmem>>, vector<1x1x1x32xf32>
    %70 = vector.shape_cast %69 : vector<1x1x1x32xf32> to vector<1x32xf32>
    %71 = vector.broadcast %70 : vector<1x32xf32> to vector<16x32xf32>
    %72 = arith.addf %68, %71 : vector<16x32xf32>
    %cst_65 = arith.constant 0.176776692 : f32
    %73 = vector.broadcast %cst_65 : f32 to vector<16x32xf32>
    %74 = arith.mulf %58, %73 : vector<16x32xf32>
    %75 = arith.truncf %74 : vector<16x32xf32> to vector<16x32xbf16>
    %76 = vector.shape_cast %75 : vector<16x32xbf16> to vector<1x16x32xbf16>
    %77 = arith.truncf %65 : vector<16x32xf32> to vector<16x32xbf16>
    %78 = vector.shape_cast %77 : vector<16x32xbf16> to vector<1x16x32xbf16>
    %79 = arith.truncf %72 : vector<16x32xf32> to vector<16x32xbf16>
    %80 = vector.shape_cast %79 : vector<16x32xbf16> to vector<1x16x32xbf16>
    "tpu.trace_start"() <{level = 10 : i32, message = "bqd,bkd->bqk"}> : () -> ()
    %cst_66 = arith.constant dense<0.000000e+00> : vector<1x16x16xf32>
    %81 = tpu.matmul %76, %78, %cst_66 {dimension_numbers = #tpu.dot_dimension_numbers<[2], [2], [1], [1], [0, 0, 0, 1, 1, 1], [0], [0]>} : vector<1x16x32xbf16>, vector<1x16x32xbf16>, vector<1x16x16xf32> -> vector<1x16x16xf32>
    "tpu.trace_stop"() : () -> ()
    %cst_67 = arith.constant dense<0xFF800000> : vector<1x16xf32>
    %82 = vector.multi_reduction <maximumf>, %81, %cst_67 [2] : vector<1x16x16xf32> to vector<1x16xf32>
    %83 = vector.shape_cast %82 : vector<1x16xf32> to vector<1x16x1xf32>
    %84 = vector.broadcast %83 : vector<1x16x1xf32> to vector<1x16x16xf32>
    %85 = arith.subf %81, %84 : vector<1x16x16xf32>
    %86 = math.exp %85 : vector<1x16x16xf32>
    %cst_68 = arith.constant dense<0.000000e+00> : vector<1x16xf32>
    %87 = vector.multi_reduction <add>, %86, %cst_68 [2] : vector<1x16x16xf32> to vector<1x16xf32>
    %88 = vector.shape_cast %87 : vector<1x16xf32> to vector<1x16x1xf32>
    %89 = vector.broadcast %88 : vector<1x16x1xf32> to vector<1x16x16xf32>
    %90 = arith.divf %86, %89 : vector<1x16x16xf32>
    %91 = arith.truncf %90 : vector<1x16x16xf32> to vector<1x16x16xbf16>
    "tpu.trace_start"() <{level = 10 : i32, message = "bqk,bkd->bqd"}> : () -> ()
    %cst_69 = arith.constant dense<0.000000e+00> : vector<1x16x32xf32>
    %92 = tpu.matmul %91, %80, %cst_69 {dimension_numbers = #tpu.dot_dimension_numbers<[2], [1], [1], [2], [0, 0, 0, 1, 1, 2], [0], [0]>} : vector<1x16x16xbf16>, vector<1x16x32xbf16>, vector<1x16x32xf32> -> vector<1x16x32xf32>
    "tpu.trace_stop"() : () -> ()
    %93 = arith.truncf %92 : vector<1x16x32xf32> to vector<1x16x32xbf16>
    %94 = vector.shape_cast %93 : vector<1x16x32xbf16> to vector<16x32xbf16>
    %c0_70 = arith.constant 0 : index
    %c1_71 = arith.constant 1 : index
    %c0_72 = arith.constant 0 : index
    %c0_73 = arith.constant 0 : index
    %95 = vector.load %arg9[%c0_70, %c1_71, %c0_72, %c0_73] : memref<1x4x32x128xbf16, #tpu.memory_space<vmem>>, vector<1x1x32x128xbf16>
    %96 = vector.shape_cast %95 : vector<1x1x32x128xbf16> to vector<32x128xbf16>
    %cst_74 = arith.constant dense<0.000000e+00> : vector<16x128xf32>
    %97 = tpu.matmul %94, %96, %cst_74 {dimension_numbers = #tpu.dot_dimension_numbers<[1], [0], [0], [1], [0, 0, 1, 1], [], []>} : vector<16x32xbf16>, vector<32x128xbf16>, vector<16x128xf32> -> vector<16x128xf32>
    %98 = arith.addf %51, %97 : vector<16x128xf32>
    %c0_75 = arith.constant 0 : index
    %c2 = arith.constant 2 : index
    %c0_76 = arith.constant 0 : index
    %c0_77 = arith.constant 0 : index
    %99 = vector.load %arg3[%c0_75, %c2, %c0_76, %c0_77] : memref<1x4x128x32xbf16, #tpu.memory_space<vmem>>, vector<1x1x128x32xbf16>
    %100 = vector.shape_cast %99 : vector<1x1x128x32xbf16> to vector<128x32xbf16>
    %cst_78 = arith.constant dense<0.000000e+00> : vector<16x32xf32>
    %101 = tpu.matmul %5, %100, %cst_78 {dimension_numbers = #tpu.dot_dimension_numbers<[1], [0], [0], [1], [0, 0, 1, 1], [], []>} : vector<16x128xbf16>, vector<128x32xbf16>, vector<16x32xf32> -> vector<16x32xf32>
    %c0_79 = arith.constant 0 : index
    %c2_80 = arith.constant 2 : index
    %c0_81 = arith.constant 0 : index
    %c0_82 = arith.constant 0 : index
    %102 = vector.load %arg6[%c0_79, %c2_80, %c0_81, %c0_82] : memref<1x4x1x32xf32, #tpu.memory_space<vmem>>, vector<1x1x1x32xf32>
    %103 = vector.shape_cast %102 : vector<1x1x1x32xf32> to vector<1x32xf32>
    %104 = vector.broadcast %103 : vector<1x32xf32> to vector<16x32xf32>
    %105 = arith.addf %101, %104 : vector<16x32xf32>
    %c0_83 = arith.constant 0 : index
    %c2_84 = arith.constant 2 : index
    %c0_85 = arith.constant 0 : index
    %c0_86 = arith.constant 0 : index
    %106 = vector.load %arg4[%c0_83, %c2_84, %c0_85, %c0_86] : memref<1x4x128x32xbf16, #tpu.memory_space<vmem>>, vector<1x1x128x32xbf16>
    %107 = vector.shape_cast %106 : vector<1x1x128x32xbf16> to vector<128x32xbf16>
    %cst_87 = arith.constant dense<0.000000e+00> : vector<16x32xf32>
    %108 = tpu.matmul %5, %107, %cst_87 {dimension_numbers = #tpu.dot_dimension_numbers<[1], [0], [0], [1], [0, 0, 1, 1], [], []>} : vector<16x128xbf16>, vector<128x32xbf16>, vector<16x32xf32> -> vector<16x32xf32>
    %c0_88 = arith.constant 0 : index
    %c2_89 = arith.constant 2 : index
    %c0_90 = arith.constant 0 : index
    %c0_91 = arith.constant 0 : index
    %109 = vector.load %arg7[%c0_88, %c2_89, %c0_90, %c0_91] : memref<1x4x1x32xf32, #tpu.memory_space<vmem>>, vector<1x1x1x32xf32>
    %110 = vector.shape_cast %109 : vector<1x1x1x32xf32> to vector<1x32xf32>
    %111 = vector.broadcast %110 : vector<1x32xf32> to vector<16x32xf32>
    %112 = arith.addf %108, %111 : vector<16x32xf32>
    %c0_92 = arith.constant 0 : index
    %c2_93 = arith.constant 2 : index
    %c0_94 = arith.constant 0 : index
    %c0_95 = arith.constant 0 : index
    %113 = vector.load %arg5[%c0_92, %c2_93, %c0_94, %c0_95] : memref<1x4x128x32xbf16, #tpu.memory_space<vmem>>, vector<1x1x128x32xbf16>
    %114 = vector.shape_cast %113 : vector<1x1x128x32xbf16> to vector<128x32xbf16>
    %cst_96 = arith.constant dense<0.000000e+00> : vector<16x32xf32>
    %115 = tpu.matmul %5, %114, %cst_96 {dimension_numbers = #tpu.dot_dimension_numbers<[1], [0], [0], [1], [0, 0, 1, 1], [], []>} : vector<16x128xbf16>, vector<128x32xbf16>, vector<16x32xf32> -> vector<16x32xf32>
    %c0_97 = arith.constant 0 : index
    %c2_98 = arith.constant 2 : index
    %c0_99 = arith.constant 0 : index
    %c0_100 = arith.constant 0 : index
    %116 = vector.load %arg8[%c0_97, %c2_98, %c0_99, %c0_100] : memref<1x4x1x32xf32, #tpu.memory_space<vmem>>, vector<1x1x1x32xf32>
    %117 = vector.shape_cast %116 : vector<1x1x1x32xf32> to vector<1x32xf32>
    %118 = vector.broadcast %117 : vector<1x32xf32> to vector<16x32xf32>
    %119 = arith.addf %115, %118 : vector<16x32xf32>
    %cst_101 = arith.constant 0.176776692 : f32
    %120 = vector.broadcast %cst_101 : f32 to vector<16x32xf32>
    %121 = arith.mulf %105, %120 : vector<16x32xf32>
    %122 = arith.truncf %121 : vector<16x32xf32> to vector<16x32xbf16>
    %123 = vector.shape_cast %122 : vector<16x32xbf16> to vector<1x16x32xbf16>
    %124 = arith.truncf %112 : vector<16x32xf32> to vector<16x32xbf16>
    %125 = vector.shape_cast %124 : vector<16x32xbf16> to vector<1x16x32xbf16>
    %126 = arith.truncf %119 : vector<16x32xf32> to vector<16x32xbf16>
    %127 = vector.shape_cast %126 : vector<16x32xbf16> to vector<1x16x32xbf16>
    "tpu.trace_start"() <{level = 10 : i32, message = "bqd,bkd->bqk"}> : () -> ()
    %cst_102 = arith.constant dense<0.000000e+00> : vector<1x16x16xf32>
    %128 = tpu.matmul %123, %125, %cst_102 {dimension_numbers = #tpu.dot_dimension_numbers<[2], [2], [1], [1], [0, 0, 0, 1, 1, 1], [0], [0]>} : vector<1x16x32xbf16>, vector<1x16x32xbf16>, vector<1x16x16xf32> -> vector<1x16x16xf32>
    "tpu.trace_stop"() : () -> ()
    %cst_103 = arith.constant dense<0xFF800000> : vector<1x16xf32>
    %129 = vector.multi_reduction <maximumf>, %128, %cst_103 [2] : vector<1x16x16xf32> to vector<1x16xf32>
    %130 = vector.shape_cast %129 : vector<1x16xf32> to vector<1x16x1xf32>
    %131 = vector.broadcast %130 : vector<1x16x1xf32> to vector<1x16x16xf32>
    %132 = arith.subf %128, %131 : vector<1x16x16xf32>
    %133 = math.exp %132 : vector<1x16x16xf32>
    %cst_104 = arith.constant dense<0.000000e+00> : vector<1x16xf32>
    %134 = vector.multi_reduction <add>, %133, %cst_104 [2] : vector<1x16x16xf32> to vector<1x16xf32>
    %135 = vector.shape_cast %134 : vector<1x16xf32> to vector<1x16x1xf32>
    %136 = vector.broadcast %135 : vector<1x16x1xf32> to vector<1x16x16xf32>
    %137 = arith.divf %133, %136 : vector<1x16x16xf32>
    %138 = arith.truncf %137 : vector<1x16x16xf32> to vector<1x16x16xbf16>
    "tpu.trace_start"() <{level = 10 : i32, message = "bqk,bkd->bqd"}> : () -> ()
    %cst_105 = arith.constant dense<0.000000e+00> : vector<1x16x32xf32>
    %139 = tpu.matmul %138, %127, %cst_105 {dimension_numbers = #tpu.dot_dimension_numbers<[2], [1], [1], [2], [0, 0, 0, 1, 1, 2], [0], [0]>} : vector<1x16x16xbf16>, vector<1x16x32xbf16>, vector<1x16x32xf32> -> vector<1x16x32xf32>
    "tpu.trace_stop"() : () -> ()
    %140 = arith.truncf %139 : vector<1x16x32xf32> to vector<1x16x32xbf16>
    %141 = vector.shape_cast %140 : vector<1x16x32xbf16> to vector<16x32xbf16>
    %c0_106 = arith.constant 0 : index
    %c2_107 = arith.constant 2 : index
    %c0_108 = arith.constant 0 : index
    %c0_109 = arith.constant 0 : index
    %142 = vector.load %arg9[%c0_106, %c2_107, %c0_108, %c0_109] : memref<1x4x32x128xbf16, #tpu.memory_space<vmem>>, vector<1x1x32x128xbf16>
    %143 = vector.shape_cast %142 : vector<1x1x32x128xbf16> to vector<32x128xbf16>
    %cst_110 = arith.constant dense<0.000000e+00> : vector<16x128xf32>
    %144 = tpu.matmul %141, %143, %cst_110 {dimension_numbers = #tpu.dot_dimension_numbers<[1], [0], [0], [1], [0, 0, 1, 1], [], []>} : vector<16x32xbf16>, vector<32x128xbf16>, vector<16x128xf32> -> vector<16x128xf32>
    %145 = arith.addf %98, %144 : vector<16x128xf32>
    %c0_111 = arith.constant 0 : index
    %c3 = arith.constant 3 : index
    %c0_112 = arith.constant 0 : index
    %c0_113 = arith.constant 0 : index
    %146 = vector.load %arg3[%c0_111, %c3, %c0_112, %c0_113] : memref<1x4x128x32xbf16, #tpu.memory_space<vmem>>, vector<1x1x128x32xbf16>
    %147 = vector.shape_cast %146 : vector<1x1x128x32xbf16> to vector<128x32xbf16>
    %cst_114 = arith.constant dense<0.000000e+00> : vector<16x32xf32>
    %148 = tpu.matmul %5, %147, %cst_114 {dimension_numbers = #tpu.dot_dimension_numbers<[1], [0], [0], [1], [0, 0, 1, 1], [], []>} : vector<16x128xbf16>, vector<128x32xbf16>, vector<16x32xf32> -> vector<16x32xf32>
    %c0_115 = arith.constant 0 : index
    %c3_116 = arith.constant 3 : index
    %c0_117 = arith.constant 0 : index
    %c0_118 = arith.constant 0 : index
    %149 = vector.load %arg6[%c0_115, %c3_116, %c0_117, %c0_118] : memref<1x4x1x32xf32, #tpu.memory_space<vmem>>, vector<1x1x1x32xf32>
    %150 = vector.shape_cast %149 : vector<1x1x1x32xf32> to vector<1x32xf32>
    %151 = vector.broadcast %150 : vector<1x32xf32> to vector<16x32xf32>
    %152 = arith.addf %148, %151 : vector<16x32xf32>
    %c0_119 = arith.constant 0 : index
    %c3_120 = arith.constant 3 : index
    %c0_121 = arith.constant 0 : index
    %c0_122 = arith.constant 0 : index
    %153 = vector.load %arg4[%c0_119, %c3_120, %c0_121, %c0_122] : memref<1x4x128x32xbf16, #tpu.memory_space<vmem>>, vector<1x1x128x32xbf16>
    %154 = vector.shape_cast %153 : vector<1x1x128x32xbf16> to vector<128x32xbf16>
    %cst_123 = arith.constant dense<0.000000e+00> : vector<16x32xf32>
    %155 = tpu.matmul %5, %154, %cst_123 {dimension_numbers = #tpu.dot_dimension_numbers<[1], [0], [0], [1], [0, 0, 1, 1], [], []>} : vector<16x128xbf16>, vector<128x32xbf16>, vector<16x32xf32> -> vector<16x32xf32>
    %c0_124 = arith.constant 0 : index
    %c3_125 = arith.constant 3 : index
    %c0_126 = arith.constant 0 : index
    %c0_127 = arith.constant 0 : index
    %156 = vector.load %arg7[%c0_124, %c3_125, %c0_126, %c0_127] : memref<1x4x1x32xf32, #tpu.memory_space<vmem>>, vector<1x1x1x32xf32>
    %157 = vector.shape_cast %156 : vector<1x1x1x32xf32> to vector<1x32xf32>
    %158 = vector.broadcast %157 : vector<1x32xf32> to vector<16x32xf32>
    %159 = arith.addf %155, %158 : vector<16x32xf32>
    %c0_128 = arith.constant 0 : index
    %c3_129 = arith.constant 3 : index
    %c0_130 = arith.constant 0 : index
    %c0_131 = arith.constant 0 : index
    %160 = vector.load %arg5[%c0_128, %c3_129, %c0_130, %c0_131] : memref<1x4x128x32xbf16, #tpu.memory_space<vmem>>, vector<1x1x128x32xbf16>
    %161 = vector.shape_cast %160 : vector<1x1x128x32xbf16> to vector<128x32xbf16>
    %cst_132 = arith.constant dense<0.000000e+00> : vector<16x32xf32>
    %162 = tpu.matmul %5, %161, %cst_132 {dimension_numbers = #tpu.dot_dimension_numbers<[1], [0], [0], [1], [0, 0, 1, 1], [], []>} : vector<16x128xbf16>, vector<128x32xbf16>, vector<16x32xf32> -> vector<16x32xf32>
    %c0_133 = arith.constant 0 : index
    %c3_134 = arith.constant 3 : index
    %c0_135 = arith.constant 0 : index
    %c0_136 = arith.constant 0 : index
    %163 = vector.load %arg8[%c0_133, %c3_134, %c0_135, %c0_136] : memref<1x4x1x32xf32, #tpu.memory_space<vmem>>, vector<1x1x1x32xf32>
    %164 = vector.shape_cast %163 : vector<1x1x1x32xf32> to vector<1x32xf32>
    %165 = vector.broadcast %164 : vector<1x32xf32> to vector<16x32xf32>
    %166 = arith.addf %162, %165 : vector<16x32xf32>
    %cst_137 = arith.constant 0.176776692 : f32
    %167 = vector.broadcast %cst_137 : f32 to vector<16x32xf32>
    %168 = arith.mulf %152, %167 : vector<16x32xf32>
    %169 = arith.truncf %168 : vector<16x32xf32> to vector<16x32xbf16>
    %170 = vector.shape_cast %169 : vector<16x32xbf16> to vector<1x16x32xbf16>
    %171 = arith.truncf %159 : vector<16x32xf32> to vector<16x32xbf16>
    %172 = vector.shape_cast %171 : vector<16x32xbf16> to vector<1x16x32xbf16>
    %173 = arith.truncf %166 : vector<16x32xf32> to vector<16x32xbf16>
    %174 = vector.shape_cast %173 : vector<16x32xbf16> to vector<1x16x32xbf16>
    "tpu.trace_start"() <{level = 10 : i32, message = "bqd,bkd->bqk"}> : () -> ()
    %cst_138 = arith.constant dense<0.000000e+00> : vector<1x16x16xf32>
    %175 = tpu.matmul %170, %172, %cst_138 {dimension_numbers = #tpu.dot_dimension_numbers<[2], [2], [1], [1], [0, 0, 0, 1, 1, 1], [0], [0]>} : vector<1x16x32xbf16>, vector<1x16x32xbf16>, vector<1x16x16xf32> -> vector<1x16x16xf32>
    "tpu.trace_stop"() : () -> ()
    %cst_139 = arith.constant dense<0xFF800000> : vector<1x16xf32>
    %176 = vector.multi_reduction <maximumf>, %175, %cst_139 [2] : vector<1x16x16xf32> to vector<1x16xf32>
    %177 = vector.shape_cast %176 : vector<1x16xf32> to vector<1x16x1xf32>
    %178 = vector.broadcast %177 : vector<1x16x1xf32> to vector<1x16x16xf32>
    %179 = arith.subf %175, %178 : vector<1x16x16xf32>
    %180 = math.exp %179 : vector<1x16x16xf32>
    %cst_140 = arith.constant dense<0.000000e+00> : vector<1x16xf32>
    %181 = vector.multi_reduction <add>, %180, %cst_140 [2] : vector<1x16x16xf32> to vector<1x16xf32>
    %182 = vector.shape_cast %181 : vector<1x16xf32> to vector<1x16x1xf32>
    %183 = vector.broadcast %182 : vector<1x16x1xf32> to vector<1x16x16xf32>
    %184 = arith.divf %180, %183 : vector<1x16x16xf32>
    %185 = arith.truncf %184 : vector<1x16x16xf32> to vector<1x16x16xbf16>
    "tpu.trace_start"() <{level = 10 : i32, message = "bqk,bkd->bqd"}> : () -> ()
    %cst_141 = arith.constant dense<0.000000e+00> : vector<1x16x32xf32>
    %186 = tpu.matmul %185, %174, %cst_141 {dimension_numbers = #tpu.dot_dimension_numbers<[2], [1], [1], [2], [0, 0, 0, 1, 1, 2], [0], [0]>} : vector<1x16x16xbf16>, vector<1x16x32xbf16>, vector<1x16x32xf32> -> vector<1x16x32xf32>
    "tpu.trace_stop"() : () -> ()
    %187 = arith.truncf %186 : vector<1x16x32xf32> to vector<1x16x32xbf16>
    %188 = vector.shape_cast %187 : vector<1x16x32xbf16> to vector<16x32xbf16>
    %c0_142 = arith.constant 0 : index
    %c3_143 = arith.constant 3 : index
    %c0_144 = arith.constant 0 : index
    %c0_145 = arith.constant 0 : index
    %189 = vector.load %arg9[%c0_142, %c3_143, %c0_144, %c0_145] : memref<1x4x32x128xbf16, #tpu.memory_space<vmem>>, vector<1x1x32x128xbf16>
    %190 = vector.shape_cast %189 : vector<1x1x32x128xbf16> to vector<32x128xbf16>
    %cst_146 = arith.constant dense<0.000000e+00> : vector<16x128xf32>
    %191 = tpu.matmul %188, %190, %cst_146 {dimension_numbers = #tpu.dot_dimension_numbers<[1], [0], [0], [1], [0, 0, 1, 1], [], []>} : vector<16x32xbf16>, vector<32x128xbf16>, vector<16x128xf32> -> vector<16x128xf32>
    %192 = arith.addf %145, %191 : vector<16x128xf32>
    %c0_147 = arith.constant 0 : index
    %c0_148 = arith.constant 0 : index
    %c0_149 = arith.constant 0 : index
    %193 = vector.load %arg10[%c0_147, %c0_148, %c0_149] : memref<1x1x128xf32, #tpu.memory_space<vmem>>, vector<1x1x128xf32>
    %194 = vector.shape_cast %193 : vector<1x1x128xf32> to vector<1x128xf32>
    %195 = vector.broadcast %194 : vector<1x128xf32> to vector<16x128xf32>
    %196 = arith.addf %192, %195 : vector<16x128xf32>
    %197 = arith.addf %4, %196 : vector<16x128xf32>
    %cst_150 = arith.constant dense<0.000000e+00> : vector<16xf32>
    %198 = vector.multi_reduction <add>, %197, %cst_150 [1] : vector<16x128xf32> to vector<16xf32>
    %199 = vector.shape_cast %198 : vector<16xf32> to vector<16x1xf32>
    %cst_151 = arith.constant 1.280000e+02 : f32
    %200 = vector.broadcast %cst_151 : f32 to vector<16x1xf32>
    %201 = arith.divf %199, %200 : vector<16x1xf32>
    %202 = vector.broadcast %201 : vector<16x1xf32> to vector<16x128xf32>
    %203 = arith.subf %197, %202 : vector<16x128xf32>
    %204 = arith.mulf %203, %203 : vector<16x128xf32>
    %cst_152 = arith.constant dense<0.000000e+00> : vector<16xf32>
    %205 = vector.multi_reduction <add>, %204, %cst_152 [1] : vector<16x128xf32> to vector<16xf32>
    %206 = vector.shape_cast %205 : vector<16xf32> to vector<16x1xf32>
    %cst_153 = arith.constant 1.280000e+02 : f32
    %207 = vector.broadcast %cst_153 : f32 to vector<16x1xf32>
    %208 = arith.divf %206, %207 : vector<16x1xf32>
    %209 = vector.broadcast %201 : vector<16x1xf32> to vector<16x128xf32>
    %210 = arith.subf %197, %209 : vector<16x128xf32>
    %cst_154 = arith.constant 9.99999974E-6 : f32
    %211 = vector.broadcast %cst_154 : f32 to vector<16x1xf32>
    %212 = arith.addf %208, %211 : vector<16x1xf32>
    %213 = math.rsqrt %212 : vector<16x1xf32>
    %214 = vector.broadcast %213 : vector<16x1xf32> to vector<16x128xf32>
    %215 = arith.mulf %210, %214 : vector<16x128xf32>
    %c0_155 = arith.constant 0 : index
    %c0_156 = arith.constant 0 : index
    %c0_157 = arith.constant 0 : index
    %216 = vector.load %arg11[%c0_155, %c0_156, %c0_157] : memref<1x1x128xf32, #tpu.memory_space<vmem>>, vector<1x1x128xf32>
    %217 = vector.shape_cast %216 : vector<1x1x128xf32> to vector<1x128xf32>
    %218 = vector.broadcast %217 : vector<1x128xf32> to vector<16x128xf32>
    %219 = arith.mulf %215, %218 : vector<16x128xf32>
    %c0_158 = arith.constant 0 : index
    %c0_159 = arith.constant 0 : index
    %c0_160 = arith.constant 0 : index
    %220 = vector.load %arg12[%c0_158, %c0_159, %c0_160] : memref<1x1x128xf32, #tpu.memory_space<vmem>>, vector<1x1x128xf32>
    %221 = vector.shape_cast %220 : vector<1x1x128xf32> to vector<1x128xf32>
    %222 = vector.broadcast %221 : vector<1x128xf32> to vector<16x128xf32>
    %223 = arith.addf %219, %222 : vector<16x128xf32>
    %224 = arith.truncf %223 : vector<16x128xf32> to vector<16x128xbf16>
    %c0_161 = arith.constant 0 : index
    %c0_162 = arith.constant 0 : index
    %c0_163 = arith.constant 0 : index
    %225 = vector.load %arg13[%c0_161, %c0_162, %c0_163] : memref<1x128x256xbf16, #tpu.memory_space<vmem>>, vector<1x128x256xbf16>
    %226 = vector.shape_cast %225 : vector<1x128x256xbf16> to vector<128x256xbf16>
    %cst_164 = arith.constant dense<0.000000e+00> : vector<16x256xf32>
    %227 = tpu.matmul %224, %226, %cst_164 {dimension_numbers = #tpu.dot_dimension_numbers<[1], [0], [0], [1], [0, 0, 1, 1], [], []>} : vector<16x128xbf16>, vector<128x256xbf16>, vector<16x256xf32> -> vector<16x256xf32>
    %c0_165 = arith.constant 0 : index
    %c0_166 = arith.constant 0 : index
    %c0_167 = arith.constant 0 : index
    %228 = vector.load %arg14[%c0_165, %c0_166, %c0_167] : memref<1x1x256xf32, #tpu.memory_space<vmem>>, vector<1x1x256xf32>
    %229 = vector.shape_cast %228 : vector<1x1x256xf32> to vector<1x256xf32>
    %230 = vector.broadcast %229 : vector<1x256xf32> to vector<16x256xf32>
    %231 = arith.addf %227, %230 : vector<16x256xf32>
    %cst_168 = arith.constant 0.000000e+00 : f32
    %232 = vector.broadcast %cst_168 : f32 to vector<16x256xf32>
    %233 = arith.maximumf %231, %232 : vector<16x256xf32>
    %234 = arith.truncf %233 : vector<16x256xf32> to vector<16x256xbf16>
    %c0_169 = arith.constant 0 : index
    %c0_170 = arith.constant 0 : index
    %c0_171 = arith.constant 0 : index
    %235 = vector.load %arg15[%c0_169, %c0_170, %c0_171] : memref<1x256x128xbf16, #tpu.memory_space<vmem>>, vector<1x256x128xbf16>
    %236 = vector.shape_cast %235 : vector<1x256x128xbf16> to vector<256x128xbf16>
    %cst_172 = arith.constant dense<0.000000e+00> : vector<16x128xf32>
    %237 = tpu.matmul %234, %236, %cst_172 {dimension_numbers = #tpu.dot_dimension_numbers<[1], [0], [0], [1], [0, 0, 1, 1], [], []>} : vector<16x256xbf16>, vector<256x128xbf16>, vector<16x128xf32> -> vector<16x128xf32>
    %c0_173 = arith.constant 0 : index
    %c0_174 = arith.constant 0 : index
    %c0_175 = arith.constant 0 : index
    %238 = vector.load %arg16[%c0_173, %c0_174, %c0_175] : memref<1x1x128xf32, #tpu.memory_space<vmem>>, vector<1x1x128xf32>
    %239 = vector.shape_cast %238 : vector<1x1x128xf32> to vector<1x128xf32>
    %240 = vector.broadcast %239 : vector<1x128xf32> to vector<16x128xf32>
    %241 = arith.addf %237, %240 : vector<16x128xf32>
    %242 = arith.addf %223, %241 : vector<16x128xf32>
    %cst_176 = arith.constant dense<0.000000e+00> : vector<16xf32>
    %243 = vector.multi_reduction <add>, %242, %cst_176 [1] : vector<16x128xf32> to vector<16xf32>
    %244 = vector.shape_cast %243 : vector<16xf32> to vector<16x1xf32>
    %cst_177 = arith.constant 1.280000e+02 : f32
    %245 = vector.broadcast %cst_177 : f32 to vector<16x1xf32>
    %246 = arith.divf %244, %245 : vector<16x1xf32>
    %247 = vector.broadcast %246 : vector<16x1xf32> to vector<16x128xf32>
    %248 = arith.subf %242, %247 : vector<16x128xf32>
    %249 = arith.mulf %248, %248 : vector<16x128xf32>
    %cst_178 = arith.constant dense<0.000000e+00> : vector<16xf32>
    %250 = vector.multi_reduction <add>, %249, %cst_178 [1] : vector<16x128xf32> to vector<16xf32>
    %251 = vector.shape_cast %250 : vector<16xf32> to vector<16x1xf32>
    %cst_179 = arith.constant 1.280000e+02 : f32
    %252 = vector.broadcast %cst_179 : f32 to vector<16x1xf32>
    %253 = arith.divf %251, %252 : vector<16x1xf32>
    %254 = vector.broadcast %246 : vector<16x1xf32> to vector<16x128xf32>
    %255 = arith.subf %242, %254 : vector<16x128xf32>
    %cst_180 = arith.constant 9.99999974E-6 : f32
    %256 = vector.broadcast %cst_180 : f32 to vector<16x1xf32>
    %257 = arith.addf %253, %256 : vector<16x1xf32>
    %258 = math.rsqrt %257 : vector<16x1xf32>
    %259 = vector.broadcast %258 : vector<16x1xf32> to vector<16x128xf32>
    %260 = arith.mulf %255, %259 : vector<16x128xf32>
    %c0_181 = arith.constant 0 : index
    %c0_182 = arith.constant 0 : index
    %c0_183 = arith.constant 0 : index
    %261 = vector.load %arg17[%c0_181, %c0_182, %c0_183] : memref<1x1x128xf32, #tpu.memory_space<vmem>>, vector<1x1x128xf32>
    %262 = vector.shape_cast %261 : vector<1x1x128xf32> to vector<1x128xf32>
    %263 = vector.broadcast %262 : vector<1x128xf32> to vector<16x128xf32>
    %264 = arith.mulf %260, %263 : vector<16x128xf32>
    %c0_184 = arith.constant 0 : index
    %c0_185 = arith.constant 0 : index
    %c0_186 = arith.constant 0 : index
    %265 = vector.load %arg18[%c0_184, %c0_185, %c0_186] : memref<1x1x128xf32, #tpu.memory_space<vmem>>, vector<1x1x128xf32>
    %266 = vector.shape_cast %265 : vector<1x1x128xf32> to vector<1x128xf32>
    %267 = vector.broadcast %266 : vector<1x128xf32> to vector<16x128xf32>
    %268 = arith.addf %264, %267 : vector<16x128xf32>
    %269 = vector.shape_cast %268 : vector<16x128xf32> to vector<1x16x128xf32>
    %c0_187 = arith.constant 0 : index
    %c0_188 = arith.constant 0 : index
    %c0_189 = arith.constant 0 : index
    %270 = vector.load %arg23[%c0_187, %c0_188, %c0_189] : memref<1x16x128xf32, #tpu.memory_space<vmem>>, vector<1x16x128xf32>
    tpu.vector_store %arg23[%c0_187, %c0_188, %c0_189], %269 {strides = array<i32>} : memref<1x16x128xf32, #tpu.memory_space<vmem>>, vector<1x16x128xf32>,
    %c1_i32 = arith.constant 1 : i32
    %271 = arith.cmpi eq, %arg1, %c1_i32 : i32
    %272 = arith.extui %271 : i1 to i32
    %c0_i32_190 = arith.constant 0 : i32
    %273 = arith.cmpi ne, %272, %c0_i32_190 : i32
    scf.if %273 {
      %274 = vector.shape_cast %268 : vector<16x128xf32> to vector<1x16x128xf32>
      %cst_191 = arith.constant dense<0xFF800000> : vector<1x16xf32>
      %275 = vector.multi_reduction <maximumf>, %274, %cst_191 [2] : vector<1x16x128xf32> to vector<1x16xf32>
      %276 = vector.shape_cast %275 : vector<1x16xf32> to vector<1x1x16xf32>
      %c0_192 = arith.constant 0 : index
      %c0_193 = arith.constant 0 : index
      %c0_194 = arith.constant 0 : index
      %277 = vector.load %arg22[%c0_192, %c0_193, %c0_194] : memref<1x1x16xf32, #tpu.memory_space<vmem>>, vector<1x1x16xf32>
      tpu.vector_store %arg22[%c0_192, %c0_193, %c0_194], %276 {strides = array<i32>} : memref<1x1x16xf32, #tpu.memory_space<vmem>>, vector<1x1x16xf32>,
      %278 = arith.truncf %275 : vector<1x16xf32> to vector<1x16xbf16>
      %c0_195 = arith.constant 0 : index
      %c0_196 = arith.constant 0 : index
      %279 = vector.load %arg19[%c0_195, %c0_196] : memref<16x4xbf16, #tpu.memory_space<vmem>>, vector<16x4xbf16>
      %cst_197 = arith.constant dense<0.000000e+00> : vector<1x4xf32>
      %280 = tpu.matmul %278, %279, %cst_197 {dimension_numbers = #tpu.dot_dimension_numbers<[1], [0], [0], [1], [0, 0, 1, 1], [], []>} : vector<1x16xbf16>, vector<16x4xbf16>, vector<1x4xf32> -> vector<1x4xf32>
      %c0_198 = arith.constant 0 : index
      %c0_199 = arith.constant 0 : index
      %281 = vector.load %arg20[%c0_198, %c0_199] : memref<1x4xf32, #tpu.memory_space<vmem>>, vector<1x4xf32>
      %282 = arith.addf %280, %281 : vector<1x4xf32>
      %283 = vector.shape_cast %282 : vector<1x4xf32> to vector<1x1x4xf32>
      %c0_200 = arith.constant 0 : index
      %c0_201 = arith.constant 0 : index
      %c0_202 = arith.constant 0 : index
      %284 = vector.load %arg21[%c0_200, %c0_201, %c0_202] : memref<1x1x4xf32, #tpu.memory_space<vmem>>, vector<1x1x4xf32>
      tpu.vector_store %arg21[%c0_200, %c0_201, %c0_202], %283 {strides = array<i32>} : memref<1x1x4xf32, #tpu.memory_space<vmem>>, vector<1x1x4xf32>,
    } else {
    }
    return
  }
  func.func @transform_1(%arg0: i32, %arg1: i32) -> (i32, i32, i32, i32) {
    %c0_i32 = arith.constant 0 : i32
    %c0_i32_0 = arith.constant 0 : i32
    %c0_i32_1 = arith.constant 0 : i32
    %c0_i32_2 = arith.constant 0 : i32
    return %arg1, %c0_i32, %c0_i32_0, %c0_i32_1 : i32, i32, i32, i32
  }
  func.func @transform_2(%arg0: i32, %arg1: i32) -> (i32, i32, i32, i32) {
    %c0_i32 = arith.constant 0 : i32
    %c0_i32_0 = arith.constant 0 : i32
    %c0_i32_1 = arith.constant 0 : i32
    %c0_i32_2 = arith.constant 0 : i32
    return %arg1, %c0_i32, %c0_i32_0, %c0_i32_1 : i32, i32, i32, i32
  }
  func.func @transform_3(%arg0: i32, %arg1: i32) -> (i32, i32, i32, i32) {
    %c0_i32 = arith.constant 0 : i32
    %c0_i32_0 = arith.constant 0 : i32
    %c0_i32_1 = arith.constant 0 : i32
    %c0_i32_2 = arith.constant 0 : i32
    return %arg1, %c0_i32, %c0_i32_0, %c0_i32_1 : i32, i32, i32, i32
  }
  func.func @transform_4(%arg0: i32, %arg1: i32) -> (i32, i32, i32, i32) {
    %c0_i32 = arith.constant 0 : i32
    %c0_i32_0 = arith.constant 0 : i32
    %c0_i32_1 = arith.constant 0 : i32
    %c0_i32_2 = arith.constant 0 : i32
    return %arg1, %c0_i32, %c0_i32_0, %c0_i32_1 : i32, i32, i32, i32
  }
  func.func @transform_5(%arg0: i32, %arg1: i32) -> (i32, i32, i32, i32) {
    %c0_i32 = arith.constant 0 : i32
    %c0_i32_0 = arith.constant 0 : i32
    %c0_i32_1 = arith.constant 0 : i32
    %c0_i32_2 = arith.constant 0 : i32
    return %arg1, %c0_i32, %c0_i32_0, %c0_i32_1 : i32, i32, i32, i32
  }
  func.func @transform_6(%arg0: i32, %arg1: i32) -> (i32, i32, i32, i32) {
    %c0_i32 = arith.constant 0 : i32
    %c0_i32_0 = arith.constant 0 : i32
    %c0_i32_1 = arith.constant 0 : i32
    %c0_i32_2 = arith.constant 0 : i32
    return %arg1, %c0_i32, %c0_i32_0, %c0_i32_1 : i32, i32, i32, i32
  }
  func.func @transform_7(%arg0: i32, %arg1: i32) -> (i32, i32, i32, i32) {
    %c0_i32 = arith.constant 0 : i32
    %c0_i32_0 = arith.constant 0 : i32
    %c0_i32_1 = arith.constant 0 : i32
    %c0_i32_2 = arith.constant 0 : i32
    return %arg1, %c0_i32, %c0_i32_0, %c0_i32_1 : i32, i32, i32, i32
  }
  func.func @transform_8(%arg0: i32, %arg1: i32) -> (i32, i32, i32) {
    %c0_i32 = arith.constant 0 : i32
    %c0_i32_0 = arith.constant 0 : i32
    %c0_i32_1 = arith.constant 0 : i32
    return %arg1, %c0_i32, %c0_i32_0 : i32, i32, i32
  }
  func.func @transform_9(%arg0: i32, %arg1: i32) -> (i32, i32, i32) {
    %c0_i32 = arith.constant 0 : i32
    %c0_i32_0 = arith.constant 0 : i32
    %c0_i32_1 = arith.constant 0 : i32
    return %arg1, %c0_i32, %c0_i32_0 : i32, i32, i32
  }
  func.func @transform_10(%arg0: i32, %arg1: i32) -> (i32, i32, i32) {
    %c0_i32 = arith.constant 0 : i32
    %c0_i32_0 = arith.constant 0 : i32
    %c0_i32_1 = arith.constant 0 : i32
    return %arg1, %c0_i32, %c0_i32_0 : i32, i32, i32
  }
  func.func @transform_11(%arg0: i32, %arg1: i32) -> (i32, i32, i32) {
    %c0_i32 = arith.constant 0 : i32
    %c0_i32_0 = arith.constant 0 : i32
    %c0_i32_1 = arith.constant 0 : i32
    return %arg1, %c0_i32, %c0_i32_0 : i32, i32, i32
  }
  func.func @transform_12(%arg0: i32, %arg1: i32) -> (i32, i32, i32) {
    %c0_i32 = arith.constant 0 : i32
    %c0_i32_0 = arith.constant 0 : i32
    %c0_i32_1 = arith.constant 0 : i32
    return %arg1, %c0_i32, %c0_i32_0 : i32, i32, i32
  }
  func.func @transform_13(%arg0: i32, %arg1: i32) -> (i32, i32, i32) {
    %c0_i32 = arith.constant 0 : i32
    %c0_i32_0 = arith.constant 0 : i32
    %c0_i32_1 = arith.constant 0 : i32
    return %arg1, %c0_i32, %c0_i32_0 : i32, i32, i32
  }
  func.func @transform_14(%arg0: i32, %arg1: i32) -> (i32, i32, i32) {
    %c0_i32 = arith.constant 0 : i32
    %c0_i32_0 = arith.constant 0 : i32
    %c0_i32_1 = arith.constant 0 : i32
    return %arg1, %c0_i32, %c0_i32_0 : i32, i32, i32
  }
  func.func @transform_15(%arg0: i32, %arg1: i32) -> (i32, i32, i32) {
    %c0_i32 = arith.constant 0 : i32
    %c0_i32_0 = arith.constant 0 : i32
    %c0_i32_1 = arith.constant 0 : i32
    return %arg1, %c0_i32, %c0_i32_0 : i32, i32, i32
  }
  func.func @transform_16(%arg0: i32, %arg1: i32) -> (i32, i32, i32) {
    %c0_i32 = arith.constant 0 : i32
    %c0_i32_0 = arith.constant 0 : i32
    %c0_i32_1 = arith.constant 0 : i32
    return %arg1, %c0_i32, %c0_i32_0 : i32, i32, i32
  }
  func.func @transform_17(%arg0: i32, %arg1: i32) -> (i32, i32) {
    %c0_i32 = arith.constant 0 : i32
    %c0_i32_0 = arith.constant 0 : i32
    %c0_i32_1 = arith.constant 0 : i32
    return %c0_i32, %c0_i32_0 : i32, i32
  }
  func.func @transform_18(%arg0: i32, %arg1: i32) -> (i32, i32) {
    %c0_i32 = arith.constant 0 : i32
    %c0_i32_0 = arith.constant 0 : i32
    %c0_i32_1 = arith.constant 0 : i32
    return %c0_i32, %c0_i32_0 : i32, i32
  }
  func.func @transform_19(%arg0: i32, %arg1: i32) -> (i32, i32, i32) {
    %c0_i32 = arith.constant 0 : i32
    %c0_i32_0 = arith.constant 0 : i32
    %c0_i32_1 = arith.constant 0 : i32
    return %arg0, %c0_i32, %c0_i32_0 : i32, i32, i32
  }
  func.func @transform_20(%arg0: i32, %arg1: i32) -> (i32, i32, i32) {
    %c0_i32 = arith.constant 0 : i32
    %c0_i32_0 = arith.constant 0 : i32
    %c0_i32_1 = arith.constant 0 : i32
    return %arg0, %c0_i32, %c0_i32_0 : i32, i32, i32
  }
}

</mosaic_0001>

<bundles_post_ra>
// kernel: transformer_forward.1
= control target key start
LH: loop header
LB: loop body
LE: loop exit
PB: predicated region body
PF: predicated region fallthrough
CT: control target
= control target key end

     0   :  { %s5892_s0 = inlined_call_operand.vmem [shape: f32[2,16,128], index: 0, kind: input, shape index: {}]   ;;  %s5893_s1 = inlined_call_operand.vmem [shape: bf16[2,4,128,32], index: 1, kind: input, shape index: {}]   ;;  %s5894_s2 = inlined_call_operand.vmem [shape: bf16[2,4,128,32], index: 2, kind: input, shape index: {}]   ;;  %s5895_s3 = inlined_call_operand.vmem [shape: bf16[2,4,128,32], index: 3, kind: input, shape index: {}]   ;;  %s5896_s4 = inlined_call_operand.vmem [shape: f32[2,4,1,32], index: 4, kind: input, shape index: {}]   ;;  %s5897_s5 = inlined_call_operand.vmem [shape: f32[2,4,1,32], index: 5, kind: input, shape index: {}]   ;;  %s5898_s6 = inlined_call_operand.vmem [shape: f32[2,4,1,32], index: 6, kind: input, shape index: {}]   ;;  %s5899_s7 = inlined_call_operand.vmem [shape: bf16[2,4,32,128], index: 7, kind: input, shape index: {}]   ;;  %s5900_s8 = inlined_call_operand.vmem [shape: f32[2,1,128], index: 8, kind: input, shape index: {}]   ;;  %s5901_s9 = inlined_call_operand.vmem [shape: f32[2,1,128], index: 9, kind: input, shape index: {}]   ;;  %s5902_s10 = inlined_call_operand.vmem [shape: f32[2,1,128], index: 10, kind: input, shape index: {}]   ;;  %s5903_s11 = inlined_call_operand.vmem [shape: bf16[2,128,256], index: 11, kind: input, shape index: {}]   ;;  %s5904_s12 = inlined_call_operand.vmem [shape: f32[2,1,256], index: 12, kind: input, shape index: {}]   ;;  %s5905_s13 = inlined_call_operand.vmem [shape: bf16[2,256,128], index: 13, kind: input, shape index: {}]   ;;  %s5906_s14 = inlined_call_operand.vmem [shape: f32[2,1,128], index: 14, kind: input, shape index: {}]   ;;  %s5907_s15 = inlined_call_operand.vmem [shape: f32[2,1,128], index: 15, kind: input, shape index: {}]   ;;  %s5908_s16 = inlined_call_operand.vmem [shape: f32[2,1,128], index: 16, kind: input, shape index: {}]   ;;  %s5909_s17 = inlined_call_operand.vmem [shape: bf16[16,4], index: 17, kind: input, shape index: {}]   ;;  %s5910_s18 = inlined_call_operand.vmem [shape: f32[1,4], index: 18, kind: input, shape index: {}]   ;;  %s5911_s19 = inlined_call_operand.hbm [shape: f32[2,1,4], index: 19, kind: output, shape index: {0}]   ;;  %s5912_s20 = inlined_call_operand.hbm [shape: f32[2,1,16], index: 20, kind: output, shape index: {1}]  }
   0x1   :  { %5931 = sst [smem:[#allocation28_spill]] %s5892_s0 }
   0x2   :  { %5932 = sst [smem:[#allocation29_spill]] %s5893_s1 }
   0x3   :  { %5933 = sst [smem:[#allocation30_spill]] %s5894_s2 }
   0x4   :  { %5934 = sst [smem:[#allocation31_spill]] %s5895_s3 }
   0x5   :  { %5935 = sst [smem:[#allocation32_spill]] %s5896_s4 }
   0x6   :  { %5936 = sst [smem:[#allocation33_spill]] %s5897_s5 }
   0x7   :  { %5937 = sst [smem:[#allocation34_spill]] %s5898_s6 }
   0x8   :  { %5938 = sst [smem:[#allocation35_spill]] %s5899_s7 }
   0x9   :  { %5939 = sst [smem:[#allocation36_spill]] %s5902_s10 }
   0xa   :  { %5940 = sst [smem:[#allocation37_spill]] %s5903_s11 }
   0xb   :  { %5941 = sst [smem:[#allocation38_spill]] %s5904_s12 }
   0xc   :  { %5942 = sst [smem:[#allocation39_spill]] %s5905_s13 }
   0xd   :  { %5943 = sst [smem:[#allocation40_spill]] %s5908_s16 }
   0xe   :  { %5944 = sst [smem:[#allocation41_spill]] %s5909_s17 }
   0xf   :  { %5945 = sst [smem:[#allocation42_spill]] %s5910_s18 }
  0x10   :  { %5946 = sst [smem:[#allocation43_spill]] %s5911_s19 }
  0x11   :  { %5947 = sst [smem:[#allocation44_spill]] %s5912_s20 }
  0x12   :  { %26 = vsyncpa [#allocation5], 0 }
  0x13   :  { %28 = vsyncpa [#allocation5 + $0x1], 0 }
  0x14   :  { %29 = vsyncpa [#allocation7], 0 }
  0x15   :  { %31 = vsyncpa [#allocation7 + $0x1], 0  ;;  %s5214_s1 = smov 0   ;;  %s5216_s22 = smov 0  }
  0x16   :  { %s5218_s23 = smov 0   ;;  %s5220_s24 = smov 0  }
  0x17   :  { %s5222_s2 = smov 0   ;;  %s5224_s25 = smov 0  }
  0x18   :  { %s5226_s3 = smov 0   ;;  %s5228_s26 = smov 0  }
  0x19 LB: > { %5948 = sst [smem:[#allocation12_spill]] %s5072_s1  ;;  %s3850_s27 = sadd.s32 4294967295, %s5100_s26   ;;  %s5100_s26 = sphi %s5228_s26, %s37_s26   ;;  %s5096_s3 = sphi %s5226_s3, %s6005_s3   ;;  %s5092_s25 = sphi %s5224_s25, %s6004_s25   ;;  %s5088_s2 = sphi %s5222_s2, %s6003_s2   ;;  %s5084_s24 = sphi %s5220_s24, %s6002_s24   ;;  %s5080_s23 = sphi %s5218_s23, %s6001_s23   ;;  %s5076_s22 = sphi %s5216_s22, %s6000_s22   ;;  %s5072_s1 = sphi %s5214_s1, %s5999_s1  }
  0x1a   : > { %5949 = sst [smem:[#allocation13_spill]] %s5076_s22  ;;  %s3851_s28 = sadd.s32 4294967294, %s5100_s26  }
  0x1b   : > { %5950 = sst [smem:[#allocation14_spill]] %s5080_s23  ;;  %s46_s4 = sadd.s32 1, %s5092_s25 }
  0x1c   : > { %5951 = sst [smem:[#allocation15_spill]] %s5084_s24  ;;  %p47_p0 = scmp.ge.s32.totalorder %s46_s4, 2 }
  0x1d   : > { %5952 = sst [smem:[#allocation16_spill]] %s5088_s2  ;;  %s49_s29 = sadd.s32 1, %s5096_s3 }
  0x1e   : > { %5953 = sst [smem:[#allocation17_spill]] %s5092_s25  ;;  %p524_p1 = scmp.ne.s32.totalorder %s5080_s23, %s5076_s22 }
  0x1f   : > { %5954 = sst [smem:[#allocation18_spill]] %s5096_s3  ;;  %p525_p2 = scmp.eq.s32.totalorder %s3850_s27, 3 }
  0x20   : > { %5955 = sst [smem:[#allocation19_spill]] %s5100_s26  ;;  %s6007_s4 = smov (%p47_p0, %s46_s4), 0 }
  0x21   : > { %5956 = sst [smem:[#allocation20_spill]] %s6007_s4  ;;  %s6009_s29 = smov (!%p47_p0, %s49_s29), %s5096_s3 }
  0x22   : > { %p5263_p3 = por %p525_p2, %p524_p1  ;;  %p530_p4 = scmp.ne.s32.totalorder %s5076_s22, %s5072_s1 }
  0x23   : > { %p51_p5 = scmp.ge.s32.totalorder %s6009_s29, 2  ;;  %p531_p6 = scmp.eq.s32.totalorder %s3851_s28, 3 }
  0x24   : > { %s5957_s30 = scalar_select %p5263_p3, 1, 0 }
  0x25   : > { %p3854_p7 = scmp.ge.s32.totalorder %s5100_s26, 1  ;;  %p693_p8 = scmp.lt.s32.totalorder %s5100_s26, 5 }
  0x26   : > { %5958 = sst [smem:[#allocation21_spill]] %s5957_s30  ;;  %s6011_s29 = smov (%p51_p5, %s6009_s29), 0 }
  0x27   : > { %5959 = sst [smem:[#allocation22_spill]] %s6011_s29  ;;  %p5273_p9 = por %p531_p6, %p530_p4 }
  0x28   : > { %p694_p10 = pnand %p3854_p7, %p693_p8  ;;  %s511_s21 = ssub.s32 %s5096_s3, %s6011_s29 }
  0x29   : > { %s5960_s0 = scalar_select %p5273_p9, 1, 0 }
  0x2a   : > { %s514_s27 = sadd.s32 1, %s5080_s23  ;;  %p512_p11 = scmp.eq.s32.totalorder %s511_s21, 0 }
  0x2b   : > { %5961 = sst [smem:[#allocation23_spill]] %s5960_s0  ;;  %697 = sbr.rel (%p694_p10) target bundleno = 5577 (0x15c9), region = 92 }
  0x2c   : > { %s5281_s4 = scalar_select %p512_p11, %s5080_s23, %s514_s27  }
  0x2e   : > { %5962 = sst [smem:[#allocation24_spill]] %s5281_s4 }
  0x32   : > { %s5284_s28 = sand.u32 1, %s5076_s22   ;;  %p811_p12 = scmp.lt.s32.totalorder %s5084_s24, 1 }
  0x33   : > { %s5963_s4 = sld [smem:[#allocation29_spill]]  ;;  %s5964_s1 = sld [smem:[#allocation30_spill]] }
  0x34   : > { %s5288_s25 = scalar_select %p811_p12, %s5084_s24, 1 }
  0x35   : > { %s5965_s30 = sld [smem:[#allocation31_spill]]  ;;  %s5967_s24 = sld [smem:[#allocation32_spill]] }
  0x36   : > { %s4212_s21 = sshll.u32 %s5288_s25, 8  ;;  %s3861_s27 = sshll.u32 %s5288_s25, 2 }
  0x37   : > { %s5968_s5 = sld [smem:[#allocation33_spill]]  ;;  %s5970_s6 = sld [smem:[#allocation34_spill]] }
  0x38   : > { %s4215_s20 = sshll.u32 %s5288_s25, 6  ;;  %s5972_s7 = sld [smem:[#allocation35_spill]] }
  0x39   : > { %s5295_s23 = scalar_lea.vmem %s5963_s4, %s4212_s21  ;;  %s5300_s26 = scalar_lea.vmem %s5964_s1, %s4212_s21 }
  0x3a   : > { %s5974_s11 = sld [smem:[#allocation37_spill]]  ;;  %s5975_s12 = sld [smem:[#allocation38_spill]] }
  0x3b   : > { %s5305_s18 = scalar_lea.vmem %s5965_s30, %s4212_s21  ;;  %s5310_s16 = scalar_lea.vmem %s5967_s24, %s3861_s27 }
  0x3c   : > { %5966 = sst [smem:[#allocation25_spill]] %s5305_s18  ;;  %s3868_s30 = sshll.u32 %s5288_s25, 1 }
  0x3d   : > { %s5315_s22 = scalar_lea.vmem %s5968_s5, %s3861_s27  ;;  %s5320_s19 = scalar_lea.vmem %s5970_s6, %s3861_s27 }
  0x3e   : > { %5969 = sst [smem:[#allocation26_spill]] %s5315_s22  ;;  %s5330_s21 = scalar_lea.vmem %s5972_s7, %s4215_s20 }
  0x3f   : > { %5971 = sst [smem:[#allocation27_spill]] %s5320_s19  ;;  %s4216_s27 = sshll.u32 %s5288_s25, 7 }
  0x40   : > { %s5344_s19 = scalar_lea.vmem %s5974_s11, %s4216_s27  ;;  %s5350_s20 = scalar_lea.vmem %s5975_s12, %s3868_s30 }
  0x41   : > { %s5976_s13 = sld [smem:[#allocation39_spill]]  ;;  %s868_s22 = scalar_lea.vmem %s5906_s14, %s5288_s25 }
  0x42   : > { %s871_s6 = scalar_lea.vmem %s5907_s15, %s5288_s25  ;;  %s5977_s11 = sld [smem:[#allocation40_spill]] }
  0x43   : > { %s804_s17 = scalar_lea.vmem [#allocation4], %s5284_s28  ;;  %s810_s30 = scalar_lea.vmem [#allocation6], %s5284_s28 }
  0x44   : > { %s5978_s0 = sld [smem:[#allocation15_spill]] }
  0x47   : > { %s5355_s3 = scalar_lea.vmem %s5976_s13, %s4216_s27 }
  0x48   : > { %s874_s10 = scalar_lea.vmem %s5977_s11, %s5288_s25 }
  0x4a   : > { %p3871_p13 = scmp.ne.s32.totalorder %s5978_s0, 0 }
  0x4b   : > { %s5979_s2 = sld [smem:[#allocation16_spill]] (!%p3871_p13)  ;;  %s5980_s13 = sld [smem:[#allocation28_spill]] (!%p3871_p13) }
  0x4c   : > { %879 = sbr.rel (%p3871_p13) target bundleno = 88 (0x58), region = 96 }
  0x51   : > { %s3872_s27 = sshll.u32 (!%p3871_p13), %s5979_s2, 4 }
  0x52   : > { %s881_s4 = scalar_lea.vmem (!%p3871_p13), %s5980_s13, %s3872_s27 }
  0x53   : > { %v914_v0 = vld [vmem:[%s881_s4] sm:$0xff]  ;;  %v916_v1 = vld [vmem:[%s881_s4 + $0x8] sm:$0xff] }
  0x54   : > { %915 = vst [vmem:[#allocation2] sm:$0xff] %v914_v0  ;;  %917 = vst [vmem:[#allocation2 + $0x8] sm:$0xff] %v916_v1 }
  0x55   : > { %925 = vsyncadd [#allocation3], 256 }
  0x56   : > { %5060 = dma.done.wait [#allocation3], 256 }
  0x57   : > { %5061 = vsyncadd [#allocation3], 4294967040 }
  0x58 PF: > { %v4785_v2 = vld [vmem:[%s5300_s26] sm:$0xff]   ;;  %v5102_v3 = vmov 0.0   ;;  %v4787_v5 = vld [vmem:[%s5300_s26 + $0x8] sm:$0xff]   ;;  %vm5103_vm0 = vmmov 0   ;;  %v4789_v7 = vld [vmem:[%s5300_s26 + $0x10] sm:$0xff]   ;;  %s5981_s5 = sld [smem:[#allocation26_spill]] }
  0x59   : > { %4398 = vmatprep.subr.bf16.mxu1 %v5102_v3  ;;  %4378 = vmatprep.subr.bf16.mxu0 %v5102_v3  ;;  %v4786_v4 = vld [vmem:[%s5295_s23] sm:$0xff]   ;;  %v4788_v6 = vld [vmem:[%s5295_s23 + $0x8] sm:$0xff]   ;;  %v4790_v8 = vld [vmem:[%s5295_s23 + $0x10] sm:$0xff]   ;;  %s5982_s7 = sld [smem:[#allocation25_spill]]  ;;  %vm1274_vm1 = vcmask 261120   ;;  %vm1322_vm2 = vcmask 130048  }
  0x5a   : > { %4399 = vmatpush3.bf16.msra.mxu1 %v4785_v2  ;;  %4414 = vmatprep.mubr.msk.bf16.mxu1 %vm5103_vm0, %v5102_v3  ;;  %v4791_v9 = vld [vmem:[%s5300_s26 + $0x18] sm:$0xff]   ;;  %v4793_v11 = vld [vmem:[%s5300_s26 + $0x20] sm:$0xff]   ;;  %v4795_v13 = vld [vmem:[%s5300_s26 + $0x28] sm:$0xff]   ;;  %s5983_s11 = sld [smem:[#allocation27_spill]]  ;;  %s5989_s4 = sld [smem:[#allocation15_spill]] }
  0x5b   : > { %4400 = vmatprep.subr.bf16.mxu1 %v5102_v3  ;;  %4379 = vmatpush3.bf16.msra.mxu0 %v4786_v4  ;;  %v4792_v10 = vld [vmem:[%s5295_s23 + $0x18] sm:$0xff]   ;;  %v4794_v12 = vld [vmem:[%s5295_s23 + $0x20] sm:$0xff]   ;;  %v4796_v14 = vld [vmem:[%s5295_s23 + $0x28] sm:$0xff]   ;;  %s5986_s18 = sld [smem:[#allocation36_spill]] }
  0x5c   : > { %4380 = vmatprep.subr.bf16.mxu0 %v5102_v3  ;;  %4394 = vmatprep.mubr.msk.bf16.mxu0 %vm5103_vm0, %v5102_v3  ;;  %v4797_v15 = vld [vmem:[%s5300_s26 + $0x30] sm:$0xff]   ;;  %v4799_v17 = vld [vmem:[%s5300_s26 + $0x38] sm:$0xff]   ;;  %v3873_v22 = vld [vmem:[%s5310_s16] ss:$0 sm:$0xff] }
  0x5d   : > { %v4798_v16 = vld [vmem:[%s5295_s23 + $0x30] sm:$0xff]   ;;  %v931_v19 = vld [vmem:[#allocation2 + $0x8] sm:$0xff] }
  0x5e   : > { %4401 = vmatpush3.bf16.msra.mxu1 %v4787_v5  ;;  %v930_v18 = vld [vmem:[#allocation2] sm:$0xff]  ;;  %v4800_v20 = vld [vmem:[%s5295_s23 + $0x38] sm:$0xff]   ;;  %v3882_v23 = vld [vmem:[%s5981_s5] ss:$0 sm:$0xff] }
  0x5f   : > { %4402 = vmatprep.subr.bf16.mxu1 %v5102_v3  ;;  %4381 = vmatpush3.bf16.msra.mxu0 %v4788_v6  ;;  %v5412_v21 = vpack.c.bf16 %v931_v19, %v930_v18  ;;  %v4801_v41 = vld [vmem:[%s5982_s7] sm:$0xff]   ;;  %v4802_v42 = vld [vmem:[%s5982_s7 + $0x8] sm:$0xff]   ;;  %v4803_v43 = vld [vmem:[%s5982_s7 + $0x10] sm:$0xff]  }
  0x60   : > { %4382 = vmatprep.subr.bf16.mxu0 %v5102_v3  ;;  %v4804_v44 = vld [vmem:[%s5982_s7 + $0x18] sm:$0xff]   ;;  %v4805_v45 = vld [vmem:[%s5982_s7 + $0x20] sm:$0xff]   ;;  %v4806_v46 = vld [vmem:[%s5982_s7 + $0x28] sm:$0xff]   ;;  %p4204_p0 = scmp.ne.s32.totalorder %s5989_s4, 1 }
  0x61   : > { %v4807_v47 = vld [vmem:[%s5982_s7 + $0x30] sm:$0xff]   ;;  %v4808_v48 = vld [vmem:[%s5982_s7 + $0x38] sm:$0xff]   ;;  %v3891_v5 = vld [vmem:[%s5983_s11] ss:$0 sm:$0xff]  ;;  %s5987_s29 = scalar_lea.vmem %s5986_s18, %s5288_s25  ;;  %vm5106_vm3 = vmmov (!%p4204_p0), 0   ;;  %vm3475_vm4 = vcmask (!%p4204_p0), 130112  }
  0x62   : > { %4403 = vmatpush3.bf16.msra.mxu1 %v4789_v7  ;;  %v4809_v7 = vld [vmem:[%s5300_s26 + $0x40] sm:$0xff]   ;;  %vm3478_vm5 = vcmask (!%p4204_p0), 122880   ;;  %vm3546_vm6 = vcmask (!%p4204_p0), 24576  }
  0x63   : > { %4404 = vmatprep.subr.bf16.mxu1 %v5102_v3  ;;  %4383 = vmatpush3.bf16.msra.mxu0 %v4790_v8 }
  0x64   : > { %4384 = vmatprep.subr.bf16.mxu0 %v5102_v3 }
  0x66   : > { %4405 = vmatpush3.bf16.msra.mxu1 %v4791_v9 }
  0x67   : > { %4406 = vmatprep.subr.bf16.mxu1 %v5102_v3  ;;  %4385 = vmatpush3.bf16.msra.mxu0 %v4792_v10 }
  0x68   : > { %4386 = vmatprep.subr.bf16.mxu0 %v5102_v3 }
  0x6a   : > { %4407 = vmatpush3.bf16.msra.mxu1 %v4793_v11  ;;  %v4810_v11 = vld [vmem:[%s5300_s26 + $0x48] sm:$0xff]  }
  0x6b   : > { %4408 = vmatprep.subr.bf16.mxu1 %v5102_v3  ;;  %4387 = vmatpush3.bf16.msra.mxu0 %v4794_v12  ;;  %v4811_v12 = vld [vmem:[%s5300_s26 + $0x50] sm:$0xff]  }
  0x6c   : > { %4388 = vmatprep.subr.bf16.mxu0 %v5102_v3 }
  0x6e   : > { %4409 = vmatpush3.bf16.msra.mxu1 %v4795_v13  ;;  %v4813_v13 = vld [vmem:[%s5300_s26 + $0x58] sm:$0xff]  }
  0x6f   : > { %4410 = vmatprep.subr.bf16.mxu1 %v5102_v3  ;;  %4389 = vmatpush3.bf16.msra.mxu0 %v4796_v14  ;;  %v4815_v14 = vld [vmem:[%s5300_s26 + $0x60] sm:$0xff]  }
  0x70   : > { %4390 = vmatprep.subr.bf16.mxu0 %v5102_v3 }
  0x72   : > { %4411 = vmatpush3.bf16.msra.mxu1 %v4797_v15  ;;  %v4817_v15 = vld [vmem:[%s5300_s26 + $0x68] sm:$0xff]  }
  0x73   : > { %4412 = vmatprep.subr.bf16.mxu1 %v5102_v3  ;;  %4391 = vmatpush3.bf16.msra.mxu0 %v4798_v16  ;;  %v4819_v16 = vld [vmem:[%s5300_s26 + $0x70] sm:$0xff]  }
  0x74   : > { %4392 = vmatprep.subr.bf16.mxu0 %v5102_v3 }
  0x76   : > { %4413 = vmatpush3.bf16.msra.mxu1 %v4799_v17  ;;  %v4821_v17 = vld [vmem:[%s5300_s26 + $0x78] sm:$0xff]  }
  0x77   : > { %4393 = vmatpush3.bf16.msra.mxu0 %v4800_v20  ;;  %4438 = vmatprep.subr.bf16.mxu1 %v5102_v3 }
  0x78   : > { %4418 = vmatprep.subr.bf16.mxu0 %v5102_v3 }
  0x79   : > { %4415 = vmatmul.mubr.bf16.vlgmr.msra.gmra.mrb[0].mxu1 %v5412_v21 }
  0x7a   : > { %4395 = vmatmul.mubr.bf16.vlgmr.msra.gmra.mrb[0].mxu0 %v5412_v21  ;;  %4440 = vmatprep.mubr.msk.bf16.mxu1 %vm5103_vm0, %v5102_v3 }
  0x7b   : > { %4434 = vmatprep.mubr.msk.bf16.mxu0 %vm5103_vm0, %v5102_v3  ;;  %4419 = vmatpush3.bf16.msra.mxu0 %v4801_v41  ;;  %v4832_v41 = vld [vmem:[%s5982_s7 + $0x78] sm:$0xff]  }
  0x7c   : > { %4420 = vmatprep.subr.bf16.mxu0 %v5102_v3 }
  0x7f   : > { %4421 = vmatpush3.bf16.msra.mxu0 %v4802_v42  ;;  %v4833_v42 = vld [vmem:[%s5330_s21] sm:$0xff]  }
  0x80   : > { %4422 = vmatprep.subr.bf16.mxu0 %v5102_v3 }
  0x83   : > { %4423 = vmatpush3.bf16.msra.mxu0 %v4803_v43  ;;  %v4834_v43 = vld [vmem:[%s5330_s21 + $0x8] sm:$0xff]  }
  0x84   : > { %4424 = vmatprep.subr.bf16.mxu0 %v5102_v3 }
  0x87   : > { %4425 = vmatpush3.bf16.msra.mxu0 %v4804_v44  ;;  %v3945_v44 = vld [vmem:[%s5981_s5 + $0x1] ss:$0 sm:$0xff] }
  0x88   : > { %4426 = vmatprep.subr.bf16.mxu0 %v5102_v3 }
  0x8b   : > { %4427 = vmatpush3.bf16.msra.mxu0 %v4805_v45 }
  0x8c   : > { %4428 = vmatprep.subr.bf16.mxu0 %v5102_v3 }
  0x8f   : > { %4429 = vmatpush3.bf16.msra.mxu0 %v4806_v46 }
  0x90   : > { %4430 = vmatprep.subr.bf16.mxu0 %v5102_v3 }
  0x93   : > { %4431 = vmatpush3.bf16.msra.mxu0 %v4807_v47 }
  0x94   : > { %4432 = vmatprep.subr.bf16.mxu0 %v5102_v3 }
  0x97   : > { %4433 = vmatpush3.bf16.msra.mxu0 %v4808_v48 }
  0x98   : > { %4470 = vmatprep.subr.bf16.mxu0 %v5102_v3 }
  0x9a   : > { %4435 = vmatmul.mubr.bf16.vlgmr.msra.gmra.mrb[4].mxu0 %v5412_v21 }
  0x9b   : > { %4486 = vmatprep.mubr.msk.bf16.mxu0 %vm5103_vm0, %v5102_v3  ;;  %4471 = vmatpush3.bf16.msra.mxu0 %v4809_v7 }
  0x9c   : > { %4472 = vmatprep.subr.bf16.mxu0 %v5102_v3 }
  0x9f   : > { %4473 = vmatpush3.bf16.msra.mxu0 %v4810_v11 }
  0xa0   : > { %4474 = vmatprep.subr.bf16.mxu0 %v5102_v3 }
  0xa3   : > { %4475 = vmatpush3.bf16.msra.mxu0 %v4811_v12 }
  0xa4   : > { %4476 = vmatprep.subr.bf16.mxu0 %v5102_v3 }
  0xa7   : > { %4477 = vmatpush3.bf16.msra.mxu0 %v4813_v13 }
  0xa8   : > { %4478 = vmatprep.subr.bf16.mxu0 %v5102_v3 }
  0xab   : > { %4479 = vmatpush3.bf16.msra.mxu0 %v4815_v14 }
  0xac   : > { %4480 = vmatprep.subr.bf16.mxu0 %v5102_v3 }
  0xaf   : > { %4481 = vmatpush3.bf16.msra.mxu0 %v4817_v15 }
  0xb0   : > { %4482 = vmatprep.subr.bf16.mxu0 %v5102_v3 }
  0xb3   : > { %4483 = vmatpush3.bf16.msra.mxu0 %v4819_v16 }
  0xb4   : > { %4484 = vmatprep.subr.bf16.mxu0 %v5102_v3 }
  0xb7   : > { %4485 = vmatpush3.bf16.msra.mxu0 %v4821_v17 }
  0xb8   : > { %4510 = vmatprep.subr.bf16.mxu0 %v5102_v3 }
  0xba   : > { %4487 = vmatmul.mubr.bf16.vlgmr.msra.gmra.mrb[8].mxu0 %v5412_v21 }
  0xbb   : > { %4512 = vmatprep.mubr.msk.bf16.mxu0 %vm5103_vm0, %v5102_v3 }
 0x14c   : > { %v1150_v24 = vpop.f32.mrb[0].mxu1 }
 0x14d   : > { %v4416_v25 = vpop.f32.mrb[1].mxu1  ;;  %v1038_v26 = vpop.f32.mrb[0].mxu0  ;;  %v1151_v30 = vadd.f32 %v3882_v23, %v1150_v24 }
 0x14e   : > { %v1153_v27 = vpop.f32.mrb[2].mxu1  ;;  %v1039_v28 = vadd.f32 %v3873_v22, %v1038_v26  ;;  %v4396_v29 = vpop.f32.mrb[1].mxu0  ;;  %v4812_v25 = vld [vmem:[%s5295_s23 + $0x40] sm:$0xff]  }
 0x14f   : > { %v1154_v31 = vadd.f32 %v3882_v23, %v1153_v27  ;;  %v4417_v32 = vpop.f32.mrb[3].mxu1  ;;  %v1041_v33 = vpop.f32.mrb[2].mxu0  ;;  %v4814_v27 = vld [vmem:[%s5295_s23 + $0x48] sm:$0xff]   ;;  %v4818_v29 = vld [vmem:[%s5295_s23 + $0x58] sm:$0xff]  }
 0x150   : > { %v1269_v34 = vmul.f32 0.17677669, %v1039_v28  ;;  %v1042_v35 = vadd.f32 %v3873_v22, %v1041_v33  ;;  %v4397_v36 = vpop.f32.mrb[3].mxu0  ;;  %v4816_v28 = vld [vmem:[%s5295_s23 + $0x50] sm:$0xff]   ;;  %v4824_v33 = vld [vmem:[%s5295_s23 + $0x78] sm:$0xff]  }
 0x151   : > { %v1272_v37 = vpack.c.bf16 %v1154_v31, %v1151_v30  ;;  %v4820_v30 = vld [vmem:[%s5295_s23 + $0x60] sm:$0xff]   ;;  %v4822_v31 = vld [vmem:[%s5295_s23 + $0x68] sm:$0xff]   ;;  %v4823_v32 = vld [vmem:[%s5295_s23 + $0x70] sm:$0xff]  }
 0x152   : > { %v1270_v38 = vmul.f32 0.17677669, %v1042_v35  ;;  %v4826_v35 = vld [vmem:[%s5982_s7 + $0x48] sm:$0xff]   ;;  %v4827_v36 = vld [vmem:[%s5982_s7 + $0x50] sm:$0xff]  }
 0x153   : > { %v1279_v39 = vsel %vm1274_vm1, %v1272_v37, 0  ;;  %v4828_v37 = vld [vmem:[%s5982_s7 + $0x58] sm:$0xff]  }
 0x154   : > { %v1271_v40 = vpack.c.bf16 %v1270_v38, %v1269_v34  ;;  %4439 = vmatpush3.bf16.xpose.msra.mxu1 %v1279_v39  ;;  %v4825_v34 = vld [vmem:[%s5982_s7 + $0x40] sm:$0xff]   ;;  %v4830_v39 = vld [vmem:[%s5982_s7 + $0x68] sm:$0xff]  }
 0x155   : > { %4444 = vmatprep.subr.bf16.mxu1 %v5102_v3  ;;  %v4829_v38 = vld [vmem:[%s5982_s7 + $0x60] sm:$0xff]  }
 0x15b   : > { %4441 = vmatmul.mubr.msk.bf16.vlgmr.msra.gmra.mrb[4].mxu1 %vm1274_vm1, %v1271_v40  ;;  %v4831_v40 = vld [vmem:[%s5982_s7 + $0x70] sm:$0xff]  }
 0x15c   : > { %4446 = vmatprep.mubr.msk.bf16.mxu1 %vm5103_vm0, %v5102_v3 }
 0x16d   : > { %v1262_v1 = vpop.f32.mrb[4].mxu0 }
 0x16e   : > { %v4436_v2 = vpop.f32.mrb[5].mxu0  ;;  %v1263_v8 = vadd.f32 %v3891_v5, %v1262_v1 }
 0x16f   : > { %v1265_v4 = vpop.f32.mrb[6].mxu0 }
 0x170   : > { %v4437_v6 = vpop.f32.mrb[7].mxu0  ;;  %v1266_v9 = vadd.f32 %v3891_v5, %v1265_v4  ;;  %v3971_v5 = vld [vmem:[%s5983_s11 + $0x1] ss:$0 sm:$0xff] }
 0x172   : > { %v1273_v10 = vpack.c.bf16 %v1266_v9, %v1263_v8 }
 0x174   : > { %4445 = vmatpush3.bf16.msra.mxu1 %v1273_v10 }
 0x175   : > { %4450 = vmatprep.subr.bf16.mxu1 %v5102_v3 }
 0x18d   : > { %v1616_v45 = vpop.f32.mrb[8].mxu0 }
 0x18e   : > { %v1617_v46 = vadd.f32 %v3945_v44, %v1616_v45  ;;  %v4488_v47 = vpop.f32.mrb[9].mxu0  ;;  %v4839_v45 = vld [vmem:[%s5300_s26 + $0x90] sm:$0xff]  }
 0x18f   : > { %v1619_v48 = vpop.f32.mrb[10].mxu0  ;;  %v4843_v47 = vld [vmem:[%s5300_s26 + $0xa0] sm:$0xff]  }
 0x22e   : > { %v1315_v49 = vpop.f32.mrb[4].mxu1 }
 0x22f   : > { %v4442_v50 = vpop.f32.mrb[5].mxu1  ;;  %v1323_v51 = vsel %vm1322_vm2, %v1315_v49, -inf }
 0x230   : > { %1324 = vmax.xlane.f32.xlu0 %v1323_v51  ;;  %v1318_v52 = vpop.f32.mrb[6].mxu1  ;;  %v4489_v50 = vpop.f32.mrb[11].mxu0 }
 0x231   : > { %v4443_v53 = vpop.f32.mrb[7].mxu1  ;;  %v1326_v54 = vsel %vm1322_vm2, %v1318_v52, -inf  ;;  %v4849_v50 = vld [vmem:[%s5300_s26 + $0xb8] sm:$0xff]  }
 0x234   : > { %1327 = vmax.xlane.f32.xlu0 %v1326_v54 }
 0x2bd   : > { %v1325_v55 = vpop.xlane.xlu0 %1324 }
 0x2be   : > { %v1329_v56 = vsub.f32 %v1315_v49, %v1325_v55  ;;  %v1620_v49 = vadd.f32 %v3945_v44, %v1619_v48  ;;  %v4838_v44 = vld [vmem:[%s5330_s21 + $0x18] sm:$0xff]   ;;  %v4845_v48 = vld [vmem:[%s5300_s26 + $0xa8] sm:$0xff]  }
 0x2c0   : > { %v1331_v57 = vmul.f32 1.442695, %v1329_v56  ;;  %v1740_v51 = vpack.c.bf16 %v1620_v49, %v1617_v46  ;;  %v4841_v46 = vld [vmem:[%s5300_s26 + $0x98] sm:$0xff]   ;;  %v4847_v49 = vld [vmem:[%s5300_s26 + $0xb0] sm:$0xff]  }
 0x2c1   : > { %v1328_v58 = vpop.xlane.xlu0 %1327 }
 0x2c2   : > { %4929 = vpow2.f32 %v1331_v57  ;;  %v1330_v59 = vsub.f32 %v1318_v52, %v1328_v58  ;;  %v1746_v52 = vsel %vm1274_vm1, %v1740_v51, 0  ;;  %v3919_v58 = vld [vmem:[%s5310_s16 + $0x1] ss:$0 sm:$0xff] }
 0x2c3   : > { %4511 = vmatpush3.bf16.xpose.msra.mxu0 %v1746_v52 }
 0x2c4   : > { %v1333_v60 = vmul.f32 1.442695, %v1330_v59  ;;  %4516 = vmatprep.subr.bf16.mxu0 %v5102_v3 }
 0x2c6   : > { %4931 = vpow2.f32 %v1333_v60 }
 0x2cc   : > { %v4930_v61 = vpop.eup %4929 }
 0x2cd   : > { %v1335_v62 = vsel %vm1322_vm2, %v4930_v61, 0.0 }
 0x2ce   : > { %1336 = vadd.xlane.f32.xlu1 %v1335_v62 }
 0x2d0   : > { %v4932_v63 = vpop.eup %4931 }
 0x2d1   : > { %v1338_v0 = vsel %vm1322_vm2, %v4932_v63, 0.0 }
 0x2d2   : > { %1339 = vadd.xlane.f32.xlu1 %v1338_v0 }
 0x35b   : > { %v1337_v18 = vpop.xlane.xlu1 %1336 }
 0x35c   : > { %4933 = vrcp.f32 %v1337_v18 }
 0x35f   : > { %v1340_v19 = vpop.xlane.xlu1 %1339 }
 0x360   : > { %4935 = vrcp.f32 %v1340_v19 }
 0x366   : > { %v4934_v20 = vpop.eup %4933 }
 0x367   : > { %v1342_v23 = vmul.f32 %v4934_v20, %v4930_v61 }
 0x36a   : > { %v4936_v22 = vpop.eup %4935 }
 0x36b   : > { %v1344_v24 = vmul.f32 %v4936_v22, %v4932_v63 }
 0x36d   : > { %v1345_v26 = vpack.c.bf16 %v1344_v24, %v1342_v23 }
 0x36f   : > { %4447 = vmatmul.mubr.msk.bf16.vlgmr.msra.gmra.mrb[8].mxu1 %vm1322_vm2, %v1345_v26 }
 0x370   : > { %4451 = vmatpush3.bf16.msra.mxu1 %v4812_v25  ;;  %4466 = vmatprep.mubr.msk.bf16.mxu1 %vm5103_vm0, %v5102_v3 }
 0x371   : > { %4452 = vmatprep.subr.bf16.mxu1 %v5102_v3 }
 0x374   : > { %4453 = vmatpush3.bf16.msra.mxu1 %v4814_v27 }
 0x375   : > { %4454 = vmatprep.subr.bf16.mxu1 %v5102_v3 }
 0x378   : > { %4455 = vmatpush3.bf16.msra.mxu1 %v4816_v28 }
 0x379   : > { %4456 = vmatprep.subr.bf16.mxu1 %v5102_v3 }
 0x37c   : > { %4457 = vmatpush3.bf16.msra.mxu1 %v4818_v29 }
 0x37d   : > { %4458 = vmatprep.subr.bf16.mxu1 %v5102_v3 }
 0x380   : > { %4459 = vmatpush3.bf16.msra.mxu1 %v4820_v30 }
 0x381   : > { %4460 = vmatprep.subr.bf16.mxu1 %v5102_v3 }
 0x384   : > { %4461 = vmatpush3.bf16.msra.mxu1 %v4822_v31 }
 0x385   : > { %4462 = vmatprep.subr.bf16.mxu1 %v5102_v3 }
 0x388   : > { %4463 = vmatpush3.bf16.msra.mxu1 %v4823_v32 }
 0x389   : > { %4464 = vmatprep.subr.bf16.mxu1 %v5102_v3 }
 0x38c   : > { %4465 = vmatpush3.bf16.msra.mxu1 %v4824_v33 }
 0x38d   : > { %4490 = vmatprep.subr.bf16.mxu1 %v5102_v3 }
 0x38f   : > { %4467 = vmatmul.mubr.bf16.vlgmr.msra.gmra.mrb[12].mxu1 %v5412_v21 }
 0x390   : > { %4491 = vmatpush3.bf16.msra.mxu1 %v4825_v34  ;;  %4506 = vmatprep.mubr.msk.bf16.mxu1 %vm5103_vm0, %v5102_v3  ;;  %v4835_v34 = vld [vmem:[%s5300_s26 + $0x80] sm:$0xff]  }
 0x391   : > { %4492 = vmatprep.subr.bf16.mxu1 %v5102_v3 }
 0x394   : > { %4493 = vmatpush3.bf16.msra.mxu1 %v4826_v35 }
 0x395   : > { %4494 = vmatprep.subr.bf16.mxu1 %v5102_v3 }
 0x398   : > { %4495 = vmatpush3.bf16.msra.mxu1 %v4827_v36 }
 0x399   : > { %4496 = vmatprep.subr.bf16.mxu1 %v5102_v3 }
 0x39c   : > { %4497 = vmatpush3.bf16.msra.mxu1 %v4828_v37 }
 0x39d   : > { %4498 = vmatprep.subr.bf16.mxu1 %v5102_v3 }
 0x3a0   : > { %4499 = vmatpush3.bf16.msra.mxu1 %v4829_v38 }
 0x3a1   : > { %4500 = vmatprep.subr.bf16.mxu1 %v5102_v3 }
 0x3a4   : > { %4501 = vmatpush3.bf16.msra.mxu1 %v4830_v39 }
 0x3a5   : > { %4502 = vmatprep.subr.bf16.mxu1 %v5102_v3 }
 0x3a8   : > { %4503 = vmatpush3.bf16.msra.mxu1 %v4831_v40 }
 0x3a9   : > { %4504 = vmatprep.subr.bf16.mxu1 %v5102_v3 }
 0x3ac   : > { %4505 = vmatpush3.bf16.msra.mxu1 %v4832_v41  ;;  %v4836_v41 = vld [vmem:[%s5330_s21 + $0x10] sm:$0xff]  }
 0x3ad   : > { %4530 = vmatprep.subr.bf16.mxu1 %v5102_v3 }
 0x3af   : > { %4507 = vmatmul.mubr.bf16.vlgmr.msra.gmra.mrb[16].mxu1 %v5412_v21 }
 0x3b0   : > { %4531 = vmatpush3.bf16.msra.mxu1 %v4833_v42  ;;  %4534 = vmatprep.mubr.msk.bf16.mxu1 %vm5103_vm0, %v5102_v3 }
 0x3b1   : > { %4532 = vmatprep.subr.bf16.mxu1 %v5102_v3 }
 0x3b4   : > { %4533 = vmatpush3.bf16.msra.mxu1 %v4834_v43  ;;  %v4837_v43 = vld [vmem:[%s5300_s26 + $0x88] sm:$0xff]  }
 0x3b5   : > { %4558 = vmatprep.subr.bf16.mxu1 %v5102_v3 }
 0x442   : > { %v1383_v53 = vpop.f32.mrb[8].mxu1 }
 0x443   : > { %v4448_v54 = vpop.f32.mrb[9].mxu1 }
 0x444   : > { %v1386_v55 = vpop.f32.mrb[10].mxu1  ;;  %v4840_v54 = vld [vmem:[%s5295_s23 + $0x80] sm:$0xff]  }
 0x445   : > { %v1390_v56 = vpack.c.bf16 %v1386_v55, %v1383_v53  ;;  %v4449_v57 = vpop.f32.mrb[11].mxu1 }
 0x446   : > { %v4842_v57 = vld [vmem:[%s5295_s23 + $0x88] sm:$0xff]  }
 0x447   : > { %4535 = vmatmul.mubr.msk.bf16.vlgmr.msra.gmra.mrb[20].mxu1 %vm1274_vm1, %v1390_v56 }
 0x448   : > { %4574 = vmatprep.mubr.msk.bf16.mxu1 %vm5103_vm0, %v5102_v3  ;;  %4559 = vmatpush3.bf16.msra.mxu1 %v4835_v34  ;;  %v4860_v34 = vld [vmem:[%s5982_s7 + $0xb8] sm:$0xff]  }
 0x449   : > { %4560 = vmatprep.subr.bf16.mxu1 %v5102_v3 }
 0x44c   : > { %4561 = vmatpush3.bf16.msra.mxu1 %v4837_v43 }
 0x44d   : > { %4562 = vmatprep.subr.bf16.mxu1 %v5102_v3 }
 0x450   : > { %4563 = vmatpush3.bf16.msra.mxu1 %v4839_v45 }
 0x451   : > { %4564 = vmatprep.subr.bf16.mxu1 %v5102_v3 }
 0x454   : > { %4565 = vmatpush3.bf16.msra.mxu1 %v4841_v46 }
 0x455   : > { %4566 = vmatprep.subr.bf16.mxu1 %v5102_v3 }
 0x458   : > { %4567 = vmatpush3.bf16.msra.mxu1 %v4843_v47 }
 0x459   : > { %4568 = vmatprep.subr.bf16.mxu1 %v5102_v3 }
 0x45c   : > { %4569 = vmatpush3.bf16.msra.mxu1 %v4845_v48 }
 0x45d   : > { %4570 = vmatprep.subr.bf16.mxu1 %v5102_v3 }
 0x460   : > { %4571 = vmatpush3.bf16.msra.mxu1 %v4847_v49 }
 0x461   : > { %4572 = vmatprep.subr.bf16.mxu1 %v5102_v3 }
 0x462   : > { %v1502_v59 = vpop.f32.mrb[12].mxu1 }
 0x463   : > { %v1503_v60 = vadd.f32 %v3919_v58, %v1502_v59  ;;  %v4468_v61 = vpop.f32.mrb[13].mxu1  ;;  %v4846_v59 = vld [vmem:[%s5295_s23 + $0x98] sm:$0xff]  }
 0x464   : > { %v1505_v62 = vpop.f32.mrb[14].mxu1  ;;  %4573 = vmatpush3.bf16.msra.mxu1 %v4849_v50  ;;  %v4850_v61 = vld [vmem:[%s5295_s23 + $0xa8] sm:$0xff]  }
 0x465   : > { %v1506_v63 = vadd.f32 %v3919_v58, %v1505_v62  ;;  %v4469_v0 = vpop.f32.mrb[15].mxu1  ;;  %v1737_v1 = vmul.f32 0.17677669, %v1503_v60  ;;  %4598 = vmatprep.subr.bf16.mxu1 %v5102_v3  ;;  %v4844_v58 = vld [vmem:[%s5295_s23 + $0x90] sm:$0xff]   ;;  %v4848_v60 = vld [vmem:[%s5295_s23 + $0xa0] sm:$0xff]  }
 0x466   : > { %v4851_v62 = vld [vmem:[%s5295_s23 + $0xb0] sm:$0xff]   ;;  %v4035_v0 = vld [vmem:[%s5981_s5 + $0x2] ss:$0 sm:$0xff] }
 0x467   : > { %v1738_v2 = vmul.f32 0.17677669, %v1506_v63  ;;  %4575 = vmatmul.mubr.bf16.vlgmr.msra.gmra.mrb[24].mxu1 %v5412_v21  ;;  %v4852_v63 = vld [vmem:[%s5295_s23 + $0xb8] sm:$0xff]  }
 0x468   : > { %4600 = vmatprep.mubr.msk.bf16.mxu1 %vm5103_vm0, %v5102_v3 }
 0x469   : > { %v1739_v4 = vpack.c.bf16 %v1738_v2, %v1737_v1 }
 0x46b   : > { %4513 = vmatmul.mubr.msk.bf16.vlgmr.msra.gmra.mrb[12].mxu0 %vm1274_vm1, %v1739_v4 }
 0x46c   : > { %4518 = vmatprep.mubr.msk.bf16.mxu0 %vm5103_vm0, %v5102_v3 }
 0x482   : > { %v1730_v6 = vpop.f32.mrb[16].mxu1 }
 0x483   : > { %v1731_v7 = vadd.f32 %v3971_v5, %v1730_v6  ;;  %v4508_v8 = vpop.f32.mrb[17].mxu1 }
 0x484   : > { %v1733_v9 = vpop.f32.mrb[18].mxu1 }
 0x485   : > { %v1734_v10 = vadd.f32 %v3971_v5, %v1733_v9  ;;  %v4509_v11 = vpop.f32.mrb[19].mxu1 }
 0x487   : > { %v1741_v12 = vpack.c.bf16 %v1734_v10, %v1731_v7 }
 0x489   : > { %4517 = vmatpush3.bf16.msra.mxu0 %v1741_v12 }
 0x48a   : > { %4522 = vmatprep.subr.bf16.mxu0 %v5102_v3 }
 0x51a   : > { %v5530_v13 = vpop.f32.mrb[20].mxu1 }
 0x51b   : > { %v4536_v14 = vpop.f32.mrb[21].mxu1 }
 0x51c   : > { %v5532_v15 = vpop.f32.mrb[22].mxu1 }
 0x51d   : > { %v4537_v16 = vpop.f32.mrb[23].mxu1 }
 0x53a   : > { %v2195_v1 = vpop.f32.mrb[24].mxu1 }
 0x53b   : > { %v2196_v2 = vadd.f32 %v4035_v0, %v2195_v1  ;;  %v4576_v4 = vpop.f32.mrb[25].mxu1 }
 0x53c   : > { %v2198_v5 = vpop.f32.mrb[26].mxu1 }
 0x53d   : > { %v2199_v6 = vadd.f32 %v4035_v0, %v2198_v5  ;;  %v4577_v7 = vpop.f32.mrb[27].mxu1  ;;  %v4863_v5 = vld [vmem:[%s5300_s26 + $0xc8] sm:$0xff]  }
 0x53e   : > { %v1782_v17 = vpop.f32.mrb[12].mxu0  ;;  %v4865_v7 = vld [vmem:[%s5300_s26 + $0xd0] sm:$0xff]  }
 0x53f   : > { %v4514_v18 = vpop.f32.mrb[13].mxu0  ;;  %v1789_v19 = vsel %vm1322_vm2, %v1782_v17, -inf  ;;  %v2319_v8 = vpack.c.bf16 %v2199_v6, %v2196_v2  ;;  %v4862_v2 = vld [vmem:[%s5330_s21 + $0x20] sm:$0xff]   ;;  %v4864_v6 = vld [vmem:[%s5330_s21 + $0x28] sm:$0xff]  }
 0x540   : > { %1790 = vmax.xlane.f32.xlu0 %v1789_v19  ;;  %v1785_v20 = vpop.f32.mrb[14].mxu0  ;;  %v4009_v18 = vld [vmem:[%s5310_s16 + $0x2] ss:$0 sm:$0xff] }
 0x541   : > { %v4515_v22 = vpop.f32.mrb[15].mxu0  ;;  %v1792_v23 = vsel %vm1322_vm2, %v1785_v20, -inf  ;;  %v2325_v9 = vsel %vm1274_vm1, %v2319_v8, 0  ;;  %v4867_v8 = vld [vmem:[%s5300_s26 + $0xd8] sm:$0xff]  }
 0x542   : > { %1793 = vmax.xlane.f32.xlu1 %v1792_v23  ;;  %4599 = vmatpush3.bf16.xpose.msra.mxu1 %v2325_v9  ;;  %v4869_v9 = vld [vmem:[%s5300_s26 + $0xe0] sm:$0xff]  }
 0x543   : > { %4604 = vmatprep.subr.bf16.mxu1 %v5102_v3 }
 0x5cd   : > { %v1791_v24 = vpop.xlane.xlu0 %1790 }
 0x5ce   : > { %v1795_v25 = vsub.f32 %v1782_v17, %v1791_v24 }
 0x5cf   : > { %v1794_v26 = vpop.xlane.xlu1 %1793 }
 0x5d0   : > { %v1797_v27 = vmul.f32 1.442695, %v1795_v25  ;;  %v1796_v28 = vsub.f32 %v1785_v20, %v1794_v26 }
 0x5d2   : > { %4937 = vpow2.f32 %v1797_v27  ;;  %v1799_v29 = vmul.f32 1.442695, %v1796_v28  ;;  %v4854_v28 = vld [vmem:[%s5982_s7 + $0x88] sm:$0xff]  }
 0x5d4   : > { %4939 = vpow2.f32 %v1799_v29  ;;  %v4855_v29 = vld [vmem:[%s5982_s7 + $0x90] sm:$0xff]  }
 0x5dc   : > { %v4938_v30 = vpop.eup %4937 }
 0x5dd   : > { %v1801_v31 = vsel %vm1322_vm2, %v4938_v30, 0.0 }
 0x5de   : > { %v4940_v32 = vpop.eup %4939  ;;  %1802 = vadd.xlane.f32.xlu0 %v1801_v31  ;;  %v4857_v31 = vld [vmem:[%s5982_s7 + $0xa0] sm:$0xff]  }
 0x5df   : > { %v1804_v33 = vsel %vm1322_vm2, %v4940_v32, 0.0 }
 0x5e0   : > { %1805 = vadd.xlane.f32.xlu1 %v1804_v33  ;;  %v4859_v33 = vld [vmem:[%s5982_s7 + $0xb0] sm:$0xff]  }
 0x66b   : > { %v1803_v35 = vpop.xlane.xlu0 %1802 }
 0x66c   : > { %4941 = vrcp.f32 %v1803_v35 }
 0x66d   : > { %v1806_v36 = vpop.xlane.xlu1 %1805 }
 0x66e   : > { %4943 = vrcp.f32 %v1806_v36 }
 0x676   : > { %v4942_v37 = vpop.eup %4941 }
 0x677   : > { %v1808_v39 = vmul.f32 %v4942_v37, %v4938_v30  ;;  %v4856_v30 = vld [vmem:[%s5982_s7 + $0x98] sm:$0xff]  }
 0x678   : > { %v4944_v38 = vpop.eup %4943 }
 0x679   : > { %v1810_v40 = vmul.f32 %v4944_v38, %v4940_v32  ;;  %v4858_v32 = vld [vmem:[%s5982_s7 + $0xa8] sm:$0xff]  }
 0x67b   : > { %v1811_v42 = vpack.c.bf16 %v1810_v40, %v1808_v39 }
 0x67d   : > { %4519 = vmatmul.mubr.msk.bf16.vlgmr.msra.gmra.mrb[16].mxu0 %vm1322_vm2, %v1811_v42 }
 0x67e   : > { %4523 = vmatpush3.bf16.msra.mxu0 %v4836_v41  ;;  %4526 = vmatprep.mubr.msk.bf16.mxu0 %vm5103_vm0, %v5102_v3 }
 0x67f   : > { %4524 = vmatprep.subr.bf16.mxu0 %v5102_v3 }
 0x682   : > { %4525 = vmatpush3.bf16.msra.mxu0 %v4838_v44 }
 0x683   : > { %4538 = vmatprep.subr.bf16.mxu0 %v5102_v3 }
 0x750   : > { %v1849_v51 = vpop.f32.mrb[16].mxu0 }
 0x751   : > { %v4520_v52 = vpop.f32.mrb[17].mxu0 }
 0x752   : > { %v1852_v53 = vpop.f32.mrb[18].mxu0 }
 0x753   : > { %v1856_v55 = vpack.c.bf16 %v1852_v53, %v1849_v51  ;;  %v4521_v56 = vpop.f32.mrb[19].mxu0 }
 0x755   : > { %4527 = vmatmul.mubr.msk.bf16.vlgmr.msra.gmra.mrb[20].mxu0 %vm1274_vm1, %v1856_v55 }
 0x756   : > { %4539 = vmatpush3.bf16.msra.mxu0 %v4840_v54  ;;  %4554 = vmatprep.mubr.msk.bf16.mxu0 %vm5103_vm0, %v5102_v3  ;;  %v4061_v54 = vld [vmem:[%s5983_s11 + $0x2] ss:$0 sm:$0xff] }
 0x757   : > { %4540 = vmatprep.subr.bf16.mxu0 %v5102_v3 }
 0x75a   : > { %4541 = vmatpush3.bf16.msra.mxu0 %v4842_v57 }
 0x75b   : > { %4542 = vmatprep.subr.bf16.mxu0 %v5102_v3 }
 0x75e   : > { %4543 = vmatpush3.bf16.msra.mxu0 %v4844_v58 }
 0x75f   : > { %4544 = vmatprep.subr.bf16.mxu0 %v5102_v3 }
 0x762   : > { %4545 = vmatpush3.bf16.msra.mxu0 %v4846_v59  ;;  %v4861_v59 = vld [vmem:[%s5300_s26 + $0xc0] sm:$0xff]  }
 0x763   : > { %4546 = vmatprep.subr.bf16.mxu0 %v5102_v3 }
 0x766   : > { %4547 = vmatpush3.bf16.msra.mxu0 %v4848_v60 }
 0x767   : > { %4548 = vmatprep.subr.bf16.mxu0 %v5102_v3 }
 0x76a   : > { %4549 = vmatpush3.bf16.msra.mxu0 %v4850_v61 }
 0x76b   : > { %4550 = vmatprep.subr.bf16.mxu0 %v5102_v3 }
 0x76e   : > { %4551 = vmatpush3.bf16.msra.mxu0 %v4851_v62 }
 0x76f   : > { %4552 = vmatprep.subr.bf16.mxu0 %v5102_v3 }
 0x772   : > { %4553 = vmatpush3.bf16.msra.mxu0 %v4852_v63 }
 0x773   : > { %4578 = vmatprep.subr.bf16.mxu0 %v5102_v3 }
 0x775   : > { %4555 = vmatmul.mubr.bf16.vlgmr.msra.gmra.mrb[24].mxu0 %v5412_v21 }
 0x776   : > { %4594 = vmatprep.mubr.msk.bf16.mxu0 %vm5103_vm0, %v5102_v3 }
 0x828   : > { %v1911_v10 = vpop.f32.mrb[20].mxu0 }
 0x829   : > { %v5590_v11 = vadd.f32 %v5530_v13, %v1911_v10  ;;  %v4528_v12 = vpop.f32.mrb[21].mxu0  ;;  %v4871_v10 = vld [vmem:[%s5300_s26 + $0xe8] sm:$0xff]  }
 0x82a   : > { %v1914_v14 = vpop.f32.mrb[22].mxu0  ;;  %v4873_v12 = vld [vmem:[%s5300_s26 + $0xf0] sm:$0xff]  }
 0x82b   : > { %v5593_v16 = vadd.f32 %v5532_v15, %v1914_v14  ;;  %v4529_v17 = vpop.f32.mrb[23].mxu0  ;;  %v4853_v15 = vld [vmem:[%s5982_s7 + $0x80] sm:$0xff]   ;;  %v4875_v14 = vld [vmem:[%s5300_s26 + $0xf8] sm:$0xff]  }
 0x82c   : > { %4579 = vmatpush3.bf16.msra.mxu0 %v4853_v15  ;;  %v4877_v15 = vld [vmem:[%s5295_s23 + $0xf0] sm:$0xff]  }
 0x82d   : > { %4580 = vmatprep.subr.bf16.mxu0 %v5102_v3 }
 0x830   : > { %4581 = vmatpush3.bf16.msra.mxu0 %v4854_v28  ;;  %v4878_v28 = vld [vmem:[%s5295_s23 + $0xf8] sm:$0xff]  }
 0x831   : > { %4582 = vmatprep.subr.bf16.mxu0 %v5102_v3 }
 0x834   : > { %4583 = vmatpush3.bf16.msra.mxu0 %v4855_v29  ;;  %v4122_v29 = vld [vmem:[%s5981_s5 + $0x3] ss:$0 sm:$0xff] }
 0x835   : > { %4584 = vmatprep.subr.bf16.mxu0 %v5102_v3 }
 0x838   : > { %4585 = vmatpush3.bf16.msra.mxu0 %v4856_v30 }
 0x839   : > { %4586 = vmatprep.subr.bf16.mxu0 %v5102_v3 }
 0x83c   : > { %4587 = vmatpush3.bf16.msra.mxu0 %v4857_v31 }
 0x83d   : > { %4588 = vmatprep.subr.bf16.mxu0 %v5102_v3 }
 0x840   : > { %4589 = vmatpush3.bf16.msra.mxu0 %v4858_v32 }
 0x841   : > { %4590 = vmatprep.subr.bf16.mxu0 %v5102_v3 }
 0x844   : > { %4591 = vmatpush3.bf16.msra.mxu0 %v4859_v33 }
 0x845   : > { %4592 = vmatprep.subr.bf16.mxu0 %v5102_v3 }
 0x848   : > { %v2081_v19 = vpop.f32.mrb[24].mxu0  ;;  %4593 = vmatpush3.bf16.msra.mxu0 %v4860_v34 }
 0x849   : > { %v2082_v20 = vadd.f32 %v4009_v18, %v2081_v19  ;;  %v4556_v22 = vpop.f32.mrb[25].mxu0  ;;  %4638 = vmatprep.subr.bf16.mxu0 %v5102_v3 }
 0x84a   : > { %v2084_v23 = vpop.f32.mrb[26].mxu0 }
 0x84b   : > { %v2085_v24 = vadd.f32 %v4009_v18, %v2084_v23  ;;  %v4557_v25 = vpop.f32.mrb[27].mxu0  ;;  %v2316_v26 = vmul.f32 0.17677669, %v2082_v20  ;;  %4595 = vmatmul.mubr.bf16.vlgmr.msra.gmra.mrb[28].mxu0 %v5412_v21  ;;  %v4866_v20 = vld [vmem:[%s5295_s23 + $0xc0] sm:$0xff]  }
 0x84c   : > { %4654 = vmatprep.mubr.msk.bf16.mxu0 %vm5103_vm0, %v5102_v3  ;;  %4639 = vmatpush3.bf16.msra.mxu0 %v4861_v59  ;;  %v4870_v25 = vld [vmem:[%s5295_s23 + $0xd0] sm:$0xff]   ;;  %v4886_v59 = vld [vmem:[%s5982_s7 + $0xf8] sm:$0xff]  }
 0x84d   : > { %v2317_v13 = vmul.f32 0.17677669, %v2085_v24  ;;  %4640 = vmatprep.subr.bf16.mxu0 %v5102_v3  ;;  %v4868_v24 = vld [vmem:[%s5295_s23 + $0xc8] sm:$0xff]  }
 0x84f   : > { %v2318_v27 = vpack.c.bf16 %v2317_v13, %v2316_v26  ;;  %v4872_v26 = vld [vmem:[%s5295_s23 + $0xd8] sm:$0xff]   ;;  %v4874_v13 = vld [vmem:[%s5295_s23 + $0xe0] sm:$0xff]  }
 0x850   : > { %4641 = vmatpush3.bf16.msra.mxu0 %v4863_v5 }
 0x851   : > { %4601 = vmatmul.mubr.msk.bf16.vlgmr.msra.gmra.mrb[28].mxu1 %vm1274_vm1, %v2318_v27  ;;  %4642 = vmatprep.subr.bf16.mxu0 %v5102_v3  ;;  %v4876_v27 = vld [vmem:[%s5295_s23 + $0xe8] sm:$0xff]  }
 0x852   : > { %4606 = vmatprep.mubr.msk.bf16.mxu1 %vm5103_vm0, %v5102_v3 }
 0x854   : > { %4643 = vmatpush3.bf16.msra.mxu0 %v4865_v7 }
 0x855   : > { %4644 = vmatprep.subr.bf16.mxu0 %v5102_v3 }
 0x858   : > { %4645 = vmatpush3.bf16.msra.mxu0 %v4867_v8 }
 0x859   : > { %4646 = vmatprep.subr.bf16.mxu0 %v5102_v3 }
 0x85c   : > { %4647 = vmatpush3.bf16.msra.mxu0 %v4869_v9 }
 0x85d   : > { %4648 = vmatprep.subr.bf16.mxu0 %v5102_v3 }
 0x860   : > { %4649 = vmatpush3.bf16.msra.mxu0 %v4871_v10 }
 0x861   : > { %4650 = vmatprep.subr.bf16.mxu0 %v5102_v3 }
 0x864   : > { %4651 = vmatpush3.bf16.msra.mxu0 %v4873_v12 }
 0x865   : > { %4652 = vmatprep.subr.bf16.mxu0 %v5102_v3 }
 0x868   : > { %4653 = vmatpush3.bf16.msra.mxu0 %v4875_v14 }
 0x869   : > { %4678 = vmatprep.subr.bf16.mxu0 %v5102_v3 }
 0x86b   : > { %4655 = vmatmul.mubr.bf16.vlgmr.msra.gmra.mrb[32].mxu0 %v5412_v21 }
 0x86c   : > { %4680 = vmatprep.mubr.msk.bf16.mxu0 %vm5103_vm0, %v5102_v3 }
 0x91e   : > { %v2309_v51 = vpop.f32.mrb[28].mxu0 }
 0x91f   : > { %v4596_v52 = vpop.f32.mrb[29].mxu0  ;;  %v2310_v56 = vadd.f32 %v4061_v54, %v2309_v51 }
 0x920   : > { %v2312_v53 = vpop.f32.mrb[30].mxu0 }
 0x921   : > { %v4597_v55 = vpop.f32.mrb[31].mxu0  ;;  %v2313_v57 = vadd.f32 %v4061_v54, %v2312_v53  ;;  %v4880_v53 = vld [vmem:[%s5982_s7 + $0xc8] sm:$0xff]   ;;  %v4881_v54 = vld [vmem:[%s5982_s7 + $0xd0] sm:$0xff]  }
 0x922   : > { %v4882_v55 = vld [vmem:[%s5982_s7 + $0xd8] sm:$0xff]  }
 0x923   : > { %v2320_v58 = vpack.c.bf16 %v2313_v57, %v2310_v56  ;;  %v4883_v56 = vld [vmem:[%s5982_s7 + $0xe0] sm:$0xff]   ;;  %v4884_v57 = vld [vmem:[%s5982_s7 + $0xe8] sm:$0xff]  }
 0x924   : > { %v2361_v35 = vpop.f32.mrb[28].mxu1 }
 0x925   : > { %v4602_v36 = vpop.f32.mrb[29].mxu1  ;;  %v2368_v37 = vsel %vm1322_vm2, %v2361_v35, -inf  ;;  %4605 = vmatpush3.bf16.msra.mxu1 %v2320_v58  ;;  %v4885_v58 = vld [vmem:[%s5982_s7 + $0xf0] sm:$0xff]  }
 0x926   : > { %2369 = vmax.xlane.f32.xlu0 %v2368_v37  ;;  %v2364_v38 = vpop.f32.mrb[30].mxu1  ;;  %4610 = vmatprep.subr.bf16.mxu1 %v5102_v3 }
 0x927   : > { %v4603_v39 = vpop.f32.mrb[31].mxu1  ;;  %v2371_v40 = vsel %vm1322_vm2, %v2364_v38, -inf }
 0x928   : > { %2372 = vmax.xlane.f32.xlu1 %v2371_v40 }
 0x93e   : > { %v2720_v30 = vpop.f32.mrb[32].mxu0 }
 0x93f   : > { %v2721_v31 = vadd.f32 %v4122_v29, %v2720_v30  ;;  %v4656_v32 = vpop.f32.mrb[33].mxu0 }
 0x940   : > { %v2723_v33 = vpop.f32.mrb[34].mxu0 }
 0x941   : > { %v2724_v34 = vadd.f32 %v4122_v29, %v2723_v33  ;;  %v4887_v29 = vld [vmem:[%s5330_s21 + $0x30] sm:$0xff]  }
 0x943   : > { %v2844_v36 = vpack.c.bf16 %v2724_v34, %v2721_v31  ;;  %v4888_v31 = vld [vmem:[%s5330_s21 + $0x38] sm:$0xff]  }
 0x945   : > { %v2850_v37 = vsel %vm1274_vm1, %v2844_v36, 0 }
 0x946   : > { %4679 = vmatpush3.bf16.xpose.msra.mxu0 %v2850_v37 }
 0x947   : > { %4684 = vmatprep.subr.bf16.mxu0 %v5102_v3 }
 0x9b3   : > { %v2370_v41 = vpop.xlane.xlu0 %2369 }
 0x9b4   : > { %v2374_v42 = vsub.f32 %v2361_v35, %v2370_v41  ;;  %v4657_v35 = vpop.f32.mrb[35].mxu0 }
 0x9b5   : > { %v2373_v43 = vpop.xlane.xlu1 %2372 }
 0x9b6   : > { %v2376_v44 = vmul.f32 1.442695, %v2374_v42  ;;  %v2375_v45 = vsub.f32 %v2364_v38, %v2373_v43 }
 0x9b8   : > { %4945 = vpow2.f32 %v2376_v44  ;;  %v2378_v46 = vmul.f32 1.442695, %v2375_v45  ;;  %v4096_v44 = vld [vmem:[%s5310_s16 + $0x3] ss:$0 sm:$0xff]  ;;  %s5984_s16 = scalar_lea.vmem %s5900_s8, %s5288_s25 }
 0x9ba   : > { %4947 = vpow2.f32 %v2378_v46 }
 0x9c2   : > { %v4946_v47 = vpop.eup %4945 }
 0x9c3   : > { %v2380_v48 = vsel %vm1322_vm2, %v4946_v47, 0.0 }
 0x9c4   : > { %v4948_v49 = vpop.eup %4947  ;;  %2381 = vadd.xlane.f32.xlu0 %v2380_v48 }
 0x9c5   : > { %v2383_v50 = vsel %vm1322_vm2, %v4948_v49, 0.0 }
 0x9c6   : > { %2384 = vadd.xlane.f32.xlu1 %v2383_v50 }
 0xa51   : > { %v2382_v60 = vpop.xlane.xlu0 %2381 }
 0xa52   : > { %4949 = vrcp.f32 %v2382_v60 }
 0xa53   : > { %v2385_v61 = vpop.xlane.xlu1 %2384 }
 0xa54   : > { %4951 = vrcp.f32 %v2385_v61 }
 0xa5c   : > { %v4950_v62 = vpop.eup %4949 }
 0xa5d   : > { %v2387_v0 = vmul.f32 %v4950_v62, %v4946_v47 }
 0xa5e   : > { %v4952_v63 = vpop.eup %4951 }
 0xa5f   : > { %v2389_v1 = vmul.f32 %v4952_v63, %v4948_v49 }
 0xa61   : > { %v2390_v4 = vpack.c.bf16 %v2389_v1, %v2387_v0 }
 0xa63   : > { %4607 = vmatmul.mubr.msk.bf16.vlgmr.msra.gmra.mrb[32].mxu1 %vm1322_vm2, %v2390_v4 }
 0xa64   : > { %4611 = vmatpush3.bf16.msra.mxu1 %v4862_v2  ;;  %4614 = vmatprep.mubr.msk.bf16.mxu1 %vm5103_vm0, %v5102_v3 }
 0xa65   : > { %4612 = vmatprep.subr.bf16.mxu1 %v5102_v3 }
 0xa68   : > { %4613 = vmatpush3.bf16.msra.mxu1 %v4864_v6 }
 0xa69   : > { %4618 = vmatprep.subr.bf16.mxu1 %v5102_v3 }
 0xb36   : > { %v2428_v17 = vpop.f32.mrb[32].mxu1 }
 0xb37   : > { %v4608_v18 = vpop.f32.mrb[33].mxu1 }
 0xb38   : > { %v2431_v19 = vpop.f32.mrb[34].mxu1 }
 0xb39   : > { %v2435_v22 = vpack.c.bf16 %v2431_v19, %v2428_v17  ;;  %v4609_v23 = vpop.f32.mrb[35].mxu1  ;;  %v4148_v19 = vld [vmem:[%s5983_s11 + $0x3] ss:$0 sm:$0xff]  ;;  %s5991_s11 = sld [smem:[#allocation42_spill]] (!%p4204_p0) }
 0xb3b   : > { %4615 = vmatmul.mubr.msk.bf16.vlgmr.msra.gmra.mrb[36].mxu1 %vm1274_vm1, %v2435_v22 }
 0xb3c   : > { %4619 = vmatpush3.bf16.msra.mxu1 %v4866_v20  ;;  %4634 = vmatprep.mubr.msk.bf16.mxu1 %vm5103_vm0, %v5102_v3 }
 0xb3d   : > { %4620 = vmatprep.subr.bf16.mxu1 %v5102_v3 }
 0xb40   : > { %4621 = vmatpush3.bf16.msra.mxu1 %v4868_v24 }
 0xb41   : > { %4622 = vmatprep.subr.bf16.mxu1 %v5102_v3 }
 0xb44   : > { %4623 = vmatpush3.bf16.msra.mxu1 %v4870_v25 }
 0xb45   : > { %4624 = vmatprep.subr.bf16.mxu1 %v5102_v3 }
 0xb48   : > { %4625 = vmatpush3.bf16.msra.mxu1 %v4872_v26 }
 0xb49   : > { %4626 = vmatprep.subr.bf16.mxu1 %v5102_v3 }
 0xb4c   : > { %4627 = vmatpush3.bf16.msra.mxu1 %v4874_v13 }
 0xb4d   : > { %4628 = vmatprep.subr.bf16.mxu1 %v5102_v3 }
 0xb50   : > { %4629 = vmatpush3.bf16.msra.mxu1 %v4876_v27 }
 0xb51   : > { %4630 = vmatprep.subr.bf16.mxu1 %v5102_v3 }
 0xb54   : > { %4631 = vmatpush3.bf16.msra.mxu1 %v4877_v15 }
 0xb55   : > { %4632 = vmatprep.subr.bf16.mxu1 %v5102_v3 }
 0xb58   : > { %4633 = vmatpush3.bf16.msra.mxu1 %v4878_v28 }
 0xb59   : > { %4658 = vmatprep.subr.bf16.mxu1 %v5102_v3 }
 0xb5b   : > { %4635 = vmatmul.mubr.bf16.vlgmr.msra.gmra.mrb[40].mxu1 %v5412_v21 }
 0xb5c   : > { %4674 = vmatprep.mubr.msk.bf16.mxu1 %vm5103_vm0, %v5102_v3 }
 0xc0e   : > { %v2490_v38 = vpop.f32.mrb[36].mxu1 }
 0xc0f   : > { %v5676_v39 = vadd.f32 %v2490_v38, %v5590_v11  ;;  %v4616_v40 = vpop.f32.mrb[37].mxu1  ;;  %v4166_v38 = vld [vmem:[%s5984_s16] ss:$0 sm:$0xff] }
 0xc10   : > { %v2493_v41 = vpop.f32.mrb[38].mxu1 }
 0xc11   : > { %v5679_v42 = vadd.f32 %v2493_v41, %v5593_v16  ;;  %v4617_v43 = vpop.f32.mrb[39].mxu1  ;;  %v4879_v16 = vld [vmem:[%s5982_s7 + $0xc0] sm:$0xff]   ;;  %s5990_s7 = sld [smem:[#allocation41_spill]] (!%p4204_p0) }
 0xc12   : > { %4659 = vmatpush3.bf16.msra.mxu1 %v4879_v16 }
 0xc13   : > { %4660 = vmatprep.subr.bf16.mxu1 %v5102_v3 }
 0xc16   : > { %4661 = vmatpush3.bf16.msra.mxu1 %v4880_v53 }
 0xc17   : > { %4662 = vmatprep.subr.bf16.mxu1 %v5102_v3 }
 0xc1a   : > { %4663 = vmatpush3.bf16.msra.mxu1 %v4881_v54 }
 0xc1b   : > { %4664 = vmatprep.subr.bf16.mxu1 %v5102_v3 }
 0xc1e   : > { %4665 = vmatpush3.bf16.msra.mxu1 %v4882_v55 }
 0xc1f   : > { %4666 = vmatprep.subr.bf16.mxu1 %v5102_v3 }
 0xc22   : > { %4667 = vmatpush3.bf16.msra.mxu1 %v4883_v56 }
 0xc23   : > { %4668 = vmatprep.subr.bf16.mxu1 %v5102_v3 }
 0xc26   : > { %4669 = vmatpush3.bf16.msra.mxu1 %v4884_v57 }
 0xc27   : > { %4670 = vmatprep.subr.bf16.mxu1 %v5102_v3 }
 0xc2a   : > { %4671 = vmatpush3.bf16.msra.mxu1 %v4885_v58 }
 0xc2b   : > { %4672 = vmatprep.subr.bf16.mxu1 %v5102_v3 }
 0xc2e   : > { %v2606_v45 = vpop.f32.mrb[40].mxu1  ;;  %4673 = vmatpush3.bf16.msra.mxu1 %v4886_v59  ;;  %v4897_v59 = vld [vmem:[%s5344_s19 + $0x24] ss:$8 sps:$4 sm:$0xff]  }
 0xc2f   : > { %v2607_v46 = vadd.f32 %v4096_v44, %v2606_v45  ;;  %v4636_v47 = vpop.f32.mrb[41].mxu1 }
 0xc30   : > { %v2609_v48 = vpop.f32.mrb[42].mxu1  ;;  %v4969_v47 = vld [vmem:[#allocation2] sm:$0xff] }
 0xc31   : > { %v2610_v49 = vadd.f32 %v4096_v44, %v2609_v48  ;;  %v4637_v50 = vpop.f32.mrb[43].mxu1  ;;  %v2841_v51 = vmul.f32 0.17677669, %v2607_v46  ;;  %4675 = vmatmul.mubr.bf16.vlgmr.msra.gmra.mrb[44].mxu1 %v5412_v21 }
 0xc33   : > { %v2842_v11 = vmul.f32 0.17677669, %v2610_v49  ;;  %v4970_v49 = vld [vmem:[#allocation2 + $0x8] sm:$0xff] }
 0xc35   : > { %v2843_v52 = vpack.c.bf16 %v2842_v11, %v2841_v51  ;;  %v4889_v51 = vld [vmem:[%s5344_s19] ss:$8 sps:$4 sm:$0xff]   ;;  %v4891_v11 = vld [vmem:[%s5344_s19 + $0x4] ss:$8 sps:$4 sm:$0xff]  }
 0xc37   : > { %4681 = vmatmul.mubr.msk.bf16.vlgmr.msra.gmra.mrb[36].mxu0 %vm1274_vm1, %v2843_v52  ;;  %v4894_v52 = vld [vmem:[%s5344_s19 + $0x14] ss:$8 sps:$4 sm:$0xff]  }
 0xc38   : > { %4686 = vmatprep.mubr.msk.bf16.mxu0 %vm5103_vm0, %v5102_v3 }
 0xd04   : > { %v2834_v14 = vpop.f32.mrb[44].mxu1 }
 0xd05   : > { %v4676_v17 = vpop.f32.mrb[45].mxu1  ;;  %v2835_v22 = vadd.f32 %v4148_v19, %v2834_v14  ;;  %v4917_v14 = vld [vmem:[%s5355_s3 + $0x50] sm:$0xff]  }
 0xd06   : > { %v2837_v18 = vpop.f32.mrb[46].mxu1  ;;  %v4918_v17 = vld [vmem:[%s5355_s3 + $0x10] sm:$0xff]  }
 0xd07   : > { %v4677_v20 = vpop.f32.mrb[47].mxu1  ;;  %v2838_v23 = vadd.f32 %v4148_v19, %v2837_v18  ;;  %v4919_v18 = vld [vmem:[%s5355_s3 + $0x58] sm:$0xff]  }
 0xd08   : > { %v4920_v19 = vld [vmem:[%s5355_s3 + $0x18] sm:$0xff]   ;;  %v4921_v20 = vld [vmem:[%s5355_s3 + $0x60] sm:$0xff]  }
 0xd09   : > { %v2845_v24 = vpack.c.bf16 %v2838_v23, %v2835_v22  ;;  %v4922_v22 = vld [vmem:[%s5355_s3 + $0x20] sm:$0xff]   ;;  %v4923_v23 = vld [vmem:[%s5355_s3 + $0x68] sm:$0xff]  }
 0xd0a   : > { %v2886_v60 = vpop.f32.mrb[36].mxu0 }
 0xd0b   : > { %v4682_v61 = vpop.f32.mrb[37].mxu0  ;;  %v2893_v62 = vsel %vm1322_vm2, %v2886_v60, -inf  ;;  %4685 = vmatpush3.bf16.msra.mxu0 %v2845_v24 }
 0xd0c   : > { %2894 = vmax.xlane.f32.xlu0 %v2893_v62  ;;  %v2889_v63 = vpop.f32.mrb[38].mxu0  ;;  %4690 = vmatprep.subr.bf16.mxu0 %v5102_v3  ;;  %v4900_v61 = vld [vmem:[%s5344_s19 + $0x34] ss:$8 sps:$4 sm:$0xff]   ;;  %v4898_v62 = vld [vmem:[%s5344_s19 + $0x30] ss:$8 sps:$4 sm:$0xff]  }
 0xd0d   : > { %v4683_v0 = vpop.f32.mrb[39].mxu0  ;;  %v2896_v1 = vsel %vm1322_vm2, %v2889_v63, -inf }
 0xd0e   : > { %2897 = vmax.xlane.f32.xlu1 %v2896_v1  ;;  %v4901_v0 = vld [vmem:[%s5344_s19 + $0x40] ss:$8 sps:$4 sm:$0xff]   ;;  %v4906_v1 = vld [vmem:[%s5344_s19 + $0x54] ss:$8 sps:$4 sm:$0xff]  }
 0xd99   : > { %v2895_v2 = vpop.xlane.xlu0 %2894 }
 0xd9a   : > { %v2899_v4 = vsub.f32 %v2886_v60, %v2895_v2  ;;  %v4895_v60 = vld [vmem:[%s5344_s19 + $0x20] ss:$8 sps:$4 sm:$0xff]   ;;  %v4904_v2 = vld [vmem:[%s5344_s19 + $0x50] ss:$8 sps:$4 sm:$0xff]  }
 0xd9b   : > { %v2898_v5 = vpop.xlane.xlu1 %2897 }
 0xd9c   : > { %v2901_v6 = vmul.f32 1.442695, %v2899_v4  ;;  %v2900_v7 = vsub.f32 %v2889_v63, %v2898_v5  ;;  %v4903_v63 = vld [vmem:[%s5344_s19 + $0x44] ss:$8 sps:$4 sm:$0xff]   ;;  %v4907_v5 = vld [vmem:[%s5344_s19 + $0x60] ss:$8 sps:$4 sm:$0xff]  }
 0xd9d   : > { %v4909_v4 = vld [vmem:[%s5344_s19 + $0x64] ss:$8 sps:$4 sm:$0xff]  }
 0xd9e   : > { %4953 = vpow2.f32 %v2901_v6  ;;  %v2903_v8 = vmul.f32 1.442695, %v2900_v7  ;;  %v4912_v6 = vld [vmem:[%s5344_s19 + $0x74] ss:$8 sps:$4 sm:$0xff]   ;;  %v4910_v7 = vld [vmem:[%s5344_s19 + $0x70] ss:$8 sps:$4 sm:$0xff]  }
 0xda0   : > { %4955 = vpow2.f32 %v2903_v8  ;;  %v5104_v8 = vmov 0  }
 0xda8   : > { %v4954_v21 = vpop.eup %4953 }
 0xda9   : > { %v2905_v9 = vsel %vm1322_vm2, %v4954_v21, 0.0 }
 0xdaa   : > { %v4956_v10 = vpop.eup %4955  ;;  %2906 = vadd.xlane.f32.xlu0 %v2905_v9  ;;  %v4914_v9 = vld [vmem:[%s5355_s3] sm:$0xff]  }
 0xdab   : > { %v2908_v12 = vsel %vm1322_vm2, %v4956_v10, 0.0 }
 0xdac   : > { %2909 = vadd.xlane.f32.xlu1 %v2908_v12  ;;  %v4916_v12 = vld [vmem:[%s5355_s3 + $0x8] sm:$0xff]  }
 0xe37   : > { %v2907_v25 = vpop.xlane.xlu0 %2906 }
 0xe38   : > { %4957 = vrcp.f32 %v2907_v25 }
 0xe39   : > { %v2910_v26 = vpop.xlane.xlu1 %2909 }
 0xe3a   : > { %4959 = vrcp.f32 %v2910_v26 }
 0xe42   : > { %v4958_v13 = vpop.eup %4957 }
 0xe43   : > { %v2912_v15 = vmul.f32 %v4958_v13, %v4954_v21  ;;  %v4913_v21 = vld [vmem:[%s5355_s3 + $0x40] sm:$0xff]  }
 0xe44   : > { %v4960_v27 = vpop.eup %4959  ;;  %4354 = vmatprep.subr.bf16.mxu1 %v4913_v21 }
 0xe45   : > { %v2914_v28 = vmul.f32 %v4960_v27, %v4956_v10  ;;  %v4915_v10 = vld [vmem:[%s5355_s3 + $0x48] sm:$0xff]   ;;  %4355 = vmatpush3.bf16.msra.mxu1 %v4914_v9 }
 0xe46   : > { %4356 = vmatprep.subr.bf16.mxu1 %v4915_v10 }
 0xe47   : > { %v2915_v30 = vpack.c.bf16 %v2914_v28, %v2912_v15 }
 0xe49   : > { %4687 = vmatmul.mubr.msk.bf16.vlgmr.msra.gmra.mrb[40].mxu0 %vm1322_vm2, %v2915_v30  ;;  %4357 = vmatpush3.bf16.msra.mxu1 %v4916_v12 }
 0xe4a   : > { %4691 = vmatpush3.bf16.msra.mxu0 %v4887_v29  ;;  %4694 = vmatprep.mubr.msk.bf16.mxu0 %vm5103_vm0, %v5102_v3 }
 0xe4b   : > { %4692 = vmatprep.subr.bf16.mxu0 %v5102_v3  ;;  %4358 = vmatprep.subr.bf16.mxu1 %v4917_v14 }
 0xe4d   : > { %4359 = vmatpush3.bf16.msra.mxu1 %v4918_v17 }
 0xe4e   : > { %4693 = vmatpush3.bf16.msra.mxu0 %v4888_v31  ;;  %4360 = vmatprep.subr.bf16.mxu1 %v4919_v18 }
 0xe4f   : > { %3185 = vmatprep.subr.bf16.mxu0 %v4891_v11 }
 0xe51   : > { %4361 = vmatpush3.bf16.msra.mxu1 %v4920_v19 }
 0xe52   : > { %4362 = vmatprep.subr.bf16.mxu1 %v4921_v20 }
 0xe55   : > { %4363 = vmatpush3.bf16.msra.mxu1 %v4922_v22 }
 0xe56   : > { %4364 = vmatprep.subr.bf16.mxu1 %v4923_v23 }
 0xf1c   : > { %v2953_v32 = vpop.f32.mrb[40].mxu0 }
 0xf1d   : > { %v4688_v33 = vpop.f32.mrb[41].mxu0 }
 0xf1e   : > { %v2956_v34 = vpop.f32.mrb[42].mxu0 }
 0xf1f   : > { %v2960_v35 = vpack.c.bf16 %v2956_v34, %v2953_v32  ;;  %v4689_v36 = vpop.f32.mrb[43].mxu0  ;;  %v4168_v34 = vld [vmem:[%s5987_s29] ss:$0 sm:$0xff] }
 0xf21   : > { %4695 = vmatmul.mubr.msk.bf16.vlgmr.msra.gmra.mrb[44].mxu0 %vm1274_vm1, %v2960_v35 }
 0xf22   : > { %3186 = vmatpush1.bf16.msra.mxu0 %v4889_v51  ;;  %3217 = vmatprep.mubr.bf16.mxu0 %v5104_v8 }
 0xf23   : > { %3187 = vmatprep.subr.bf16.mxu0 %v4894_v52 }
 0xff4   : > { %v3015_v37 = vpop.f32.mrb[44].mxu0 }
 0xff5   : > { %v3022_v3 = vadd.f32 %v3015_v37, %v5676_v39  ;;  %v4696_v40 = vpop.f32.mrb[45].mxu0  ;;  %v4892_v39 = vld [vmem:[%s5344_s19 + $0x10] ss:$8 sps:$4 sm:$0xff]   ;;  %s5985_s19 = scalar_lea.vmem %s5901_s9, %s5288_s25 }
 0xff6   : > { %v3018_v41 = vpop.f32.mrb[46].mxu0  ;;  %3188 = vmatpush1.bf16.msra.mxu0 %v4892_v39  ;;  %v4167_v29 = vld [vmem:[%s5985_s19] ss:$0 sm:$0xff]  ;;  %v4925_v40 = vld [vmem:[%s5355_s3 + $0x70] sm:$0xff]  }
 0xff7   : > { %v3031_v43 = vadd.f32 %v4166_v38, %v3022_v3  ;;  %v3023_v44 = vadd.f32 %v3018_v41, %v5679_v42  ;;  %v4697_v45 = vpop.f32.mrb[47].mxu0  ;;  %3189 = vmatprep.subr.bf16.mxu0 %v4897_v59  ;;  %v4924_v3 = vld [vmem:[%s5355_s3 + $0x28] sm:$0xff]   ;;  %v4926_v41 = vld [vmem:[%s5355_s3 + $0x30] sm:$0xff]  }
 0xff8   : > { %4365 = vmatpush3.bf16.msra.mxu1 %v4924_v3  ;;  %v3095_v45 = vlaneseq }
 0xff9   : > { %v3032_v46 = vadd.f32 %v4166_v38, %v3023_v44  ;;  %v3033_v48 = vadd.f32 %v4969_v47, %v3031_v43  ;;  %4366 = vmatprep.subr.bf16.mxu1 %v4925_v40  ;;  %v4927_v43 = vld [vmem:[%s5355_s3 + $0x78] sm:$0xff]  }
 0xffa   : > { %3190 = vmatpush1.bf16.msra.mxu0 %v4895_v60  ;;  %v4928_v44 = vld [vmem:[%s5355_s3 + $0x38] sm:$0xff]  }
 0xffb   : > { %3035 = vadd.xlane.f32.xlu0 %v3033_v48  ;;  %v3034_v50 = vadd.f32 %v4970_v49, %v3032_v46  ;;  %3191 = vmatprep.subr.bf16.mxu0 %v4900_v61  ;;  %v5774_v46 = vshrl.u32 %v3095_v45, 7 }
 0xffc   : > { %4367 = vmatpush3.bf16.msra.mxu1 %v4926_v41 }
 0xffd   : > { %3037 = vadd.xlane.f32.xlu1 %v3034_v50  ;;  %4368 = vmatprep.subr.bf16.mxu1 %v4927_v43  ;;  %v3097_v47 = vsub.s32 0, %v5774_v46  ;;  %v3101_v49 = vsub.s32 1, %v5774_v46 }
 0xffe   : > { %3192 = vmatpush1.bf16.msra.mxu0 %v4898_v62 }
 0xfff   : > { %3193 = vmatprep.subr.bf16.mxu0 %v4903_v63  ;;  %v4185_v63 = vld [vmem:[%s868_s22] ss:$0 sm:$0xff] }
0x1000   : > { %4369 = vmatpush3.bf16.msra.mxu1 %v4928_v44 }
0x1002   : > { %3194 = vmatpush1.bf16.msra.mxu0 %v4901_v0 }
0x1003   : > { %3195 = vmatprep.subr.bf16.mxu0 %v4906_v1 }
0x1006   : > { %3196 = vmatpush1.bf16.msra.mxu0 %v4904_v2 }
0x1007   : > { %3197 = vmatprep.subr.bf16.mxu0 %v4909_v4 }
0x100a   : > { %3198 = vmatpush1.bf16.msra.mxu0 %v4907_v5 }
0x100b   : > { %3199 = vmatprep.subr.bf16.mxu0 %v4912_v6 }
0x100e   : > { %3200 = vmatpush1.bf16.msra.mxu0 %v4910_v7 }
0x1088   : > { %v3036_v42 = vpop.xlane.xlu0 %3035 }
0x1089   : > { %v3040_v16 = vmul.f32 0.0078125, %v3036_v42 }
0x108a   : > { %v3038_v53 = vpop.xlane.xlu1 %3037 }
0x108b   : > { %v5725_v54 = vsub.f32 %v3033_v48, %v3040_v16  ;;  %v3041_v55 = vmul.f32 0.0078125, %v3038_v53  ;;  %v3093_v48 = vld [vmem:[%s5350_s20] sm:$0x3] }
0x108c   : > { %v3102_v51 = vrot.slane %v3093_v48, %v3101_v49 }
0x108d   : > { %v5727_v56 = vsub.f32 %v3034_v50, %v3041_v55  ;;  %v3044_v57 = vmul.f32 %v5725_v54, %v5725_v54  ;;  %v3098_v50 = vrot.slane %v3093_v48, %v3097_v47 }
0x108f   : > { %3046 = vadd.xlane.f32.xlu0 %v3044_v57  ;;  %v3045_v58 = vmul.f32 %v5727_v56, %v5727_v56 }
0x1091   : > { %3048 = vadd.xlane.f32.xlu1 %v3045_v58 }
0x111c   : > { %v3047_v24 = vpop.xlane.xlu0 %3046 }
0x111d   : > { %v3050_v25 = vmul.f32 0.0078125, %v3047_v24 }
0x111e   : > { %v3049_v26 = vpop.xlane.xlu1 %3048 }
0x111f   : > { %v3052_v13 = vadd.f32 1e-05, %v3050_v25  ;;  %v3051_v27 = vmul.f32 0.0078125, %v3049_v26 }
0x1121   : > { %4961 = vrsqrt.f32 %v3052_v13  ;;  %v3053_v15 = vadd.f32 1e-05, %v3051_v27 }
0x1123   : > { %4963 = vrsqrt.f32 %v3053_v15  ;;  %v4202_v15 = vld [vmem:[%s871_s6] ss:$0 sm:$0xff] }
0x112b   : > { %v4962_v28 = vpop.eup %4961 }
0x112c   : > { %v3056_v30 = vmul.f32 %v4962_v28, %v5725_v54 }
0x112d   : > { %v4964_v31 = vpop.eup %4963 }
0x112e   : > { %v3057_v32 = vmul.f32 %v4964_v31, %v5727_v56  ;;  %v3065_v33 = vmul.f32 %v4167_v29, %v3056_v30  ;;  %v4203_v30 = vld [vmem:[%s874_s10] ss:$0 sm:$0xff] }
0x1130   : > { %v3066_v35 = vmul.f32 %v4167_v29, %v3057_v32  ;;  %v3074_v36 = vadd.f32 %v4168_v34, %v3065_v33 }
0x1132   : > { %v3075_v37 = vadd.f32 %v4168_v34, %v3066_v35 }
0x1134   : > { %v3076_v38 = vpack.c.bf16 %v3075_v37, %v3074_v36 }
0x1136   : > { %3218 = vmatmul.mubr.bf16.vlgmr.msra.gmra.mrb[48].mxu0 %v3076_v38  ;;  %v3465_v38 = vand.u32 (!%p4204_p0), 127, %v3095_v45 }
0x1138   : > { %v3470_v3 = vadd.s32 (!%p4204_p0), 4294967288, %v3465_v38  ;;  %v3468_v41 = vsub.s32 (!%p4204_p0), %v3465_v38, %v5774_v46 }
0x113a   : > { %v3473_v43 = vsub.s32 (!%p4204_p0), %v3470_v3, %v5774_v46  ;;  %v3483_v46 = vld [vmem:[%s5991_s11] sm:$0x1] (!%p4204_p0) }
0x1209   : > { %v3219_v11 = vpop.f32.mrb[48].mxu0 }
0x120a   : > { %v3220_v52 = vadd.f32 %v3219_v11, %v3098_v50  ;;  %v3221_v39 = vpop.f32.mrb[49].mxu0 }
0x120b   : > { %v3222_v42 = vadd.f32 %v3221_v39, %v3102_v51  ;;  %v3223_v16 = vpop.f32.mrb[50].mxu0 }
0x120c   : > { %v3224_v53 = vadd.f32 %v3223_v16, %v3098_v50  ;;  %v3225_v54 = vpop.f32.mrb[51].mxu0  ;;  %v3228_v56 = vmax.f32 %v3220_v52, 0.0 }
0x120d   : > { %v3226_v55 = vadd.f32 %v3225_v54, %v3102_v51  ;;  %v3229_v58 = vmax.f32 %v3222_v42, 0.0 }
0x120e   : > { %v3230_v57 = vmax.f32 %v3224_v53, 0.0 }
0x120f   : > { %v3231_v59 = vmax.f32 %v3226_v55, 0.0 }
0x1210   : > { %v3232_v60 = vpack.c.bf16 %v3230_v57, %v3228_v56 }
0x1211   : > { %v3233_v61 = vpack.c.bf16 %v3231_v59, %v3229_v58 }
0x1213   : > { %3401 = vmatprep.mubr.bf16.mxu1 %v3233_v61 }
0x1214   : > { %3402 = vmatmul.mubr.bf16.vlgmr.msra.gmra.mrb[48].mxu1 %v3232_v60 }
0x12e7   : > { %v4370_v62 = vpop.f32.mrb[48].mxu1 }
0x12e8   : > { %v4371_v0 = vpop.f32.mrb[49].mxu1 }
0x12e9   : > { %v4372_v1 = vadd.f32 %v4371_v0, %v4370_v62  ;;  %v4373_v2 = vpop.f32.mrb[50].mxu1 }
0x12ea   : > { %v4374_v4 = vpop.f32.mrb[51].mxu1 }
0x12eb   : > { %v3404_v5 = vadd.f32 %v4372_v1, %v4185_v63  ;;  %v4375_v6 = vadd.f32 %v4374_v4, %v4373_v2 }
0x12ed   : > { %v3407_v7 = vadd.f32 %v4375_v6, %v4185_v63  ;;  %v3410_v8 = vadd.f32 %v3404_v5, %v3074_v36  ;;  %v4971_v36 = vld [vmem:[%s5990_s7] sm:$0xff] (!%p4204_p0)  }
0x12ef   : > { %3412 = vadd.xlane.f32.xlu0 %v3410_v8  ;;  %v3411_v21 = vadd.f32 %v3407_v7, %v3075_v37  ;;  %v5105_v37 = vmov (!%p4204_p0), 0.0  }
0x12f0   : > { %4698 = vmatprep.subr.bf16.mxu0 (!%p4204_p0), %v5105_v37  ;;  %4700 = vmatprep.mubr.msk.bf16.mxu0 (!%p4204_p0), %vm5106_vm3, %v5105_v37 }
0x12f1   : > { %3414 = vadd.xlane.f32.xlu1 %v3411_v21  ;;  %4699 = vmatpush3.bf16.msra.mxu0 (!%p4204_p0), %v4971_v36 }
0x137c   : > { %v3413_v9 = vpop.xlane.xlu0 %3412 }
0x137d   : > { %v3416_v10 = vmul.f32 0.0078125, %v3413_v9 }
0x137e   : > { %v3415_v12 = vpop.xlane.xlu1 %3414 }
0x137f   : > { %v3418_v14 = vsub.f32 %v3410_v8, %v3416_v10  ;;  %v3417_v17 = vmul.f32 0.0078125, %v3415_v12 }
0x1381   : > { %v3419_v18 = vsub.f32 %v3411_v21, %v3417_v17  ;;  %v3420_v19 = vmul.f32 %v3418_v14, %v3418_v14 }
0x1383   : > { %3422 = vadd.xlane.f32.xlu0 %v3420_v19  ;;  %v3421_v20 = vmul.f32 %v3419_v18, %v3419_v18 }
0x1385   : > { %3424 = vadd.xlane.f32.xlu1 %v3421_v20 }
0x1410   : > { %v3423_v22 = vpop.xlane.xlu0 %3422 }
0x1411   : > { %v3426_v23 = vmul.f32 0.0078125, %v3423_v22 }
0x1412   : > { %v3425_v24 = vpop.xlane.xlu1 %3424 }
0x1413   : > { %v3428_v25 = vadd.f32 1e-05, %v3426_v23  ;;  %v3427_v26 = vmul.f32 0.0078125, %v3425_v24 }
0x1415   : > { %4965 = vrsqrt.f32 %v3428_v25  ;;  %v3429_v13 = vadd.f32 1e-05, %v3427_v26 }
0x1417   : > { %4967 = vrsqrt.f32 %v3429_v13 }
0x141f   : > { %v4966_v27 = vpop.eup %4965 }
0x1420   : > { %v3432_v28 = vmul.f32 %v4966_v27, %v3418_v14 }
0x1421   : > { %v4968_v29 = vpop.eup %4967 }
0x1422   : > { %v3441_v31 = vmul.f32 %v4202_v15, %v3432_v28  ;;  %v3433_v32 = vmul.f32 %v4968_v29, %v3419_v18  ;;  %3457 = sbr.rel (%p4204_p0) target bundleno = 5528 (0x1598), region = 134 }
0x1424   : > { %v3450_v33 = vadd.f32 %v4203_v30, %v3441_v31  ;;  %v3442_v34 = vmul.f32 %v4202_v15, %v3433_v32 }
0x1426   : > { %3452 = vst [vmem:[#allocation2] sm:$0xff] %v3450_v33  ;;  %v3451_v35 = vadd.f32 %v4203_v30, %v3442_v34  ;;  %3458 = vmax.xlane.f32.xlu0 (!%p4204_p0), %v3450_v33 }
0x1428   : > { %3453 = vst [vmem:[#allocation2 + $0x8] sm:$0xff] %v3451_v35 }
0x142a   : > { %3460 = vmax.xlane.f32.xlu0 %v3451_v35 }
0x14b3   : > { %v3459_v40 = vpop.xlane.xlu0 %3458 }
0x14b4   : > { %v3469_v47 = vrot.slane %v3459_v40, %v3468_v41 }
0x14b7   : > { %v3461_v44 = vpop.xlane.xlu0 %3460 }
0x14b8   : > { %v3474_v48 = vrot.slane %v3461_v44, %v3473_v43  ;;  %v3480_v49 = vpack.c.bf16 %v3461_v44, %v3459_v40 }
0x14ba   : > { %v3476_v50 = vsel %vm3475_vm4, %v3474_v48, %v3469_v47  ;;  %v3485_v51 = vunpack.c.l.b16 %v3480_v49  ;;  %v3486_v11 = vunpack.c.h.b16 %v3480_v49 }
0x14bb   : > { %3479 = vst.msk [vmem:[%s810_s30] sm:$0x1] %vm3478_vm5, %v3476_v50 }
0x14bc   : > { %v3490_v52 = vrot.slane %v3485_v51, %v3468_v41  ;;  %v3494_v45 = vrot.slane %v3486_v11, %v3473_v43 }
0x14be   : > { %v3495_v39 = vsel %vm3475_vm4, %v3494_v45, %v3490_v52 }
0x14bf   : > { %v3496_v42 = vpack.c.b16 %v3495_v39, %v3495_v39 }
0x14c1   : > { %4701 = vmatmul.mubr.msk.bf16.vlgmr.msra.gmra.mrb[0].mxu0 %vm1322_vm2, %v3496_v42 }
0x1594   : > { %v3540_v16 = vpop.f32.mrb[0].mxu0 }
0x1595   : > { %v3541_v53 = vadd.f32 %v3540_v16, %v3483_v46  ;;  %v4702_v54 = vpop.f32.mrb[1].mxu0 }
0x1596   : > { %v3543_v55 = vpop.f32.mrb[2].mxu0 }
0x1597   : > { %3547 = vst.msk [vmem:[%s804_s17] sm:$0x1] %vm3546_vm6, %v3541_v53  ;;  %v4703_v56 = vpop.f32.mrb[3].mxu0 }
0x1598 PF: > { %s5992_s12 = sld [smem:[#allocation16_spill]]  ;;  %s5994_s19 = sld [smem:[#allocation43_spill]] }
0x1599   : > { %s3565_s1 = sshll.u32 %s804_s17, 4  ;;  %s3549_s18 = scalar_lea.sflag [#allocation5], %s5284_s28  ;;  %s3566_s1 = int_to_ptr.vmem [resolvable:$true] %s3565_s1 }
0x159a   : > { %s4972_s29 = scalar_lea.vmem %s3566_s1, 16  ;;  %s5107_s20 = smov [#allocation4]  }
0x159b   : > { %p4973_p1 = scmp.ne.s32.totalorder %s3566_s1, %s4972_s29  ;;  %s4976_s3 = sshll.u32 %s5107_s20, 4  ;;  %s4977_s3 = int_to_ptr.vmem [resolvable:$false] %s4976_s3 }
0x159c   : > { %s4978_s22 = scalar_lea.vmem %s4977_s3, 32  ;;  %p4979_p5 = scmp.lt.s32.totalorder %s3566_s1, %s4977_s3 }
0x159d   : > { %p4974_p2 = pnand %p4973_p1, %p5263_p3  ;;  %p4980_p6 = scmp.lt.s32.totalorder %s4978_s22, %s4972_s29 }
0x159e   : > { %s4207_s16 = sshll.u32 %s5992_s12, 4 }
0x159f   : > { %s5815_s21 = scalar_lea.hbm %s5994_s19, %s4207_s16  ;;  %p4975_p4 = pneg %p4974_p2 }
0x15a0   : > { %p4981_p7 = por %p4980_p6, %p4979_p5 }
0x15a2   : > { %p4982_p8 = pnand %p4981_p7, %p4975_p4 }
0x15a4   : > { %4985 = shalt.err (!%p4982_p8)
}
0x15a5   : > { %s4986_s17 = scalar_lea.hbm %s5815_s21, 16  ;;  %s4990_s27 = scalar_lea.hbm %s5994_s19, 32 }
0x15a6   : > { %p4987_p10 = scmp.ne.s32.totalorder %s5815_s21, %s4986_s17  ;;  %p4991_p13 = scmp.lt.u32.totalorder %s5815_s21, %s5994_s19 }
0x15a7   : > { %p4992_p0 = scmp.lt.u32.totalorder %s4990_s27, %s4986_s17  ;;  %p4994_p2 = scmp.lt.u32.totalorder %s4986_s17, %s5815_s21 }
0x15a8   : > { %p4988_p11 = pnand %p4987_p10, %p5263_p3 }
0x15a9   : > { %p4993_p1 = por %p4992_p0, %p4991_p13 }
0x15aa   : > { %p4989_p12 = pneg %p4988_p11 }
0x15ab   : > { %p4995_p4 = por %p4994_p2, %p4993_p1 }
0x15ad   : > { %p4996_p5 = pnand %p4995_p4, %p4989_p12 }
0x15af   : > { %4999 = shalt.err (!%p4996_p5)
}
0x15b0   : > { %4704 = dma.vmem_to_hbm [thread:$0]  (%p5263_p3), %s3566_s1, 16, %s5815_s21, %s3549_s18  }
0x15b1   : > { %s5995_s7 = sld [smem:[#allocation44_spill]]  ;;  %s3578_s25 = sshll.u32 %s810_s30, 4  ;;  %s3579_s25 = int_to_ptr.vmem [resolvable:$true] %s3578_s25 }
0x15b2   : > { %s3553_s11 = scalar_lea.sflag [#allocation7], %s5284_s28  ;;  %s5000_s23 = scalar_lea.vmem %s3579_s25, 16 }
0x15b3   : > { %p5001_p6 = scmp.ne.s32.totalorder %s3579_s25, %s5000_s23  ;;  %s5108_s26 = smov [#allocation6]  }
0x15b4   : > { %s5004_s29 = sshll.u32 %s5108_s26, 4  ;;  %s5005_s29 = int_to_ptr.vmem [resolvable:$false] %s5004_s29 }
0x15b5   : > { %p5002_p7 = pnand %p5001_p6, %p5263_p3  ;;  %s5006_s20 = scalar_lea.vmem %s5005_s29, 32 }
0x15b6   : > { %p5007_p10 = scmp.lt.s32.totalorder %s3579_s25, %s5005_s29  ;;  %p5008_p11 = scmp.lt.s32.totalorder %s5006_s20, %s5000_s23 }
0x15b7   : > { %s5842_s10 = scalar_lea.hbm %s5995_s7, %s4207_s16  ;;  %p5003_p8 = pneg %p5002_p7 }
0x15b8   : > { %p5009_p12 = por %p5008_p11, %p5007_p10 }
0x15ba   : > { %p5010_p13 = pnand %p5009_p12, %p5003_p8 }
0x15bc   : > { %5013 = shalt.err (!%p5010_p13)
}
0x15bd   : > { %s5014_s28 = scalar_lea.hbm %s5842_s10, 16  ;;  %s5018_s16 = scalar_lea.hbm %s5995_s7, 32 }
0x15be   : > { %p5015_p0 = scmp.ne.s32.totalorder %s5842_s10, %s5014_s28  ;;  %p5019_p4 = scmp.lt.u32.totalorder %s5842_s10, %s5995_s7 }
0x15bf   : > { %p5020_p5 = scmp.lt.u32.totalorder %s5018_s16, %s5014_s28  ;;  %p5022_p7 = scmp.lt.u32.totalorder %s5014_s28, %s5842_s10 }
0x15c0   : > { %p5016_p1 = pnand %p5015_p0, %p5263_p3 }
0x15c1   : > { %p5021_p6 = por %p5020_p5, %p5019_p4 }
0x15c2   : > { %p5017_p2 = pneg %p5016_p1 }
0x15c3   : > { %p5023_p8 = por %p5022_p7, %p5021_p6 }
0x15c5   : > { %p5024_p10 = pnand %p5023_p8, %p5017_p2 }
0x15c7   : > { %5027 = shalt.err (!%p5024_p10)
}
0x15c8   : > { %4705 = dma.vmem_to_hbm [thread:$0]  (%p5263_p3), %s3579_s25, 16, %s5842_s10, %s3553_s11  }
0x15c9 PF: > { %s5996_s18 = sld [smem:[#allocation19_spill]]  ;;  %s5997_s3 = sld [smem:[#allocation12_spill]] }
0x15cf   : > { %p4715_p11 = scmp.ge.s32.totalorder %s5996_s18, 2  ;;  %s3590_s17 = sand.u32 1, %s5997_s3  }
0x15d0   : > { %s3591_s0 = scalar_lea.sflag [#allocation5], %s3590_s17 }
0x15d1   : > { %p4709_p12 = pnand %p4715_p11, %p5273_p9 }
0x15d3   : > { %5063 = dma.done.wait (!%p4709_p12), %s3591_s0, 16  }
0x15d4   : > { %5065 = vsyncadd (!%p4709_p12), %s3591_s0, 4294967280  ;;  %s3599_s2 = scalar_lea.sflag [#allocation7], %s3590_s17 }
0x15d5   : > { %5067 = dma.done.wait (!%p4709_p12), %s3599_s2, 16  }
0x15d6   : > { %5069 = vsyncadd (!%p4709_p12), %s3599_s2, 4294967280  ;;  %s37_s26 = sadd.s32 1, %s5996_s18   ;;  %s5999_s1 = sld [smem:[#allocation13_spill]] }
0x15d7   : > { %p34_p13 = scmp.ge.s32.totalorder %s37_s26, 6   ;;  %s6000_s22 = sld [smem:[#allocation14_spill]] }
0x15d8   : > { %s6001_s23 = sld [smem:[#allocation24_spill]]  ;;  %s6002_s24 = sld [smem:[#allocation17_spill]] }
0x15d9   : > { %s6003_s2 = sld [smem:[#allocation18_spill]]  ;;  %s6004_s25 = sld [smem:[#allocation20_spill]] }
0x15da   : > { %s6005_s3 = sld [smem:[#allocation22_spill]]  ;;  %36 = sbr.rel (!%p34_p13) target bundleno = 25 (0x19), region = 261 }
0x15e1   :  { %3603 = vsyncpa [#allocation5], 1 }
0x15e2   :  { %3605 = vsyncpa [#allocation5 + $0x1], 1 }
0x15e3   :  { %3606 = vsyncpa [#allocation7], 1 }
0x15e4   :  { %3608 = vsyncpa [#allocation7 + $0x1], 1 }
0x15e5   :  { %3609 = vsyncmov [#allocation3] }
0x15e8   :  { %s3610_s13 = vpop.sfrf %3609 }
0x15e9   :  { %p4211_p3 = scmp.ne.s32.totalorder %s3610_s13, 0 }
0x15eb   :  { %3614 = shalt.err (%p4211_p3)  }

</bundles_post_ra>
